<compile_context>
chip_gen: v7x
topology: tpu7x:2x2x1
jax: 0.10.0
libtpu: 0.0.40
codegen_flags: <defaults>
</compile_context>

<pallas_src>
import math
from functools import partial

import jax
import jax.numpy as jnp
from jax.experimental import pallas as pl
from jax.experimental.pallas import tpu as pltpu

# Large negative stand-in for -inf: exp underflows to exactly 0 after softmax and
# avoids inf arithmetic inside the kernel. Representable in bf16.
NEG_INF = -1e30


# ----------------------------- Pallas kernel ------------------------------- #
def _mha_kernel(x_ref, mask_ref, wqkv_ref, bqkv_ref, wo_ref, bo_ref, out_ref,
                *, num_heads, compute_dtype):
    H = num_heads
    bb, N, dim = x_ref.shape
    dh = dim // H
    G = bb * H
    scale = 1.0 / math.sqrt(dh)

    # ---- fused QKV projection: ONE [bb*N, dim] x [dim, 3*dim] MXU matmul ----
    x2d = x_ref[...].reshape(bb * N, dim)                        # leading-dim merge (layout-free)
    qkv = jnp.dot(x2d, wqkv_ref[...],
                  preferred_element_type=jnp.float32) + bqkv_ref[...]   # [bb*N, 3*dim] f32

    def to_heads(a2d):                                           # [bb*N, dim] -> [bb*H, N, dh]
        return a2d.reshape(bb, N, H, dh).transpose(0, 2, 1, 3).reshape(G, N, dh)

    q = to_heads(qkv[:, :dim]).astype(compute_dtype)
    k = to_heads(qkv[:, dim:2 * dim]).astype(compute_dtype)
    v = to_heads(qkv[:, 2 * dim:]).astype(compute_dtype)

    # ---- batched (graph x head) scaled-dot-product attention; softmax in f32 ----
    mask = mask_ref[...].astype(jnp.float32)                     # [bb, N, N]
    mask_g = jnp.broadcast_to(mask[:, None], (bb, H, N, N)).reshape(G, N, N)

    s = jnp.einsum("gnd,gmd->gnm", q, k,
                   preferred_element_type=jnp.float32) * scale + mask_g   # [G, N, N] f32
    m = jnp.max(s, axis=-1, keepdims=True)
    p = jnp.exp(s - m)
    l = jnp.sum(p, axis=-1, keepdims=True)
    p = p * pl.reciprocal(l, approx=True)                        # EUP reciprocal

    o = jnp.einsum("gnm,gmd->gnd", p.astype(compute_dtype), v,
                   preferred_element_type=jnp.float32)           # [G, N, dh] f32

    # ---- output projection fused with head merge: ONE [bb*N, dim] x [dim, dim] matmul ----
    o2d = (o.reshape(bb, H, N, dh).transpose(0, 2, 1, 3)
             .reshape(bb * N, dim).astype(compute_dtype))
    out2d = jnp.dot(o2d, wo_ref[...],
                    preferred_element_type=jnp.float32) + bo_ref[...]
    out_ref[...] = out2d.reshape(bb, N, dim).astype(out_ref.dtype)


# -------------------------- parameter packing (glue) ------------------------ #
def _pack_params(params, dim, compute_dtype):
    """Fold chained linears and fuse QKV into a single [dim, 3*dim] matrix (host side)."""
    def fold(w_outer, b_outer, w_inner, b_inner):
        # y = (x @ Wo^T + bo) @ Wi^T + bi  ==  x @ (Wi @ Wo)^T + (bo @ Wi^T + bi)
        return w_inner @ w_outer, b_outer @ w_inner.T + b_inner

    wq, bq = fold(params["wq1"], params["bq1"], params["wqi"], params["bqi"])
    wk, bk = fold(params["wk1"], params["bk1"], params["wki"], params["bki"])
    wv, bv = fold(params["wv1"], params["bv1"], params["wvi"], params["bvi"])

    # Columns: [Q | K | V], each head-major in its natural output order.
    w_qkv = jnp.concatenate([wq.T, wk.T, wv.T], axis=1)          # [dim, 3*dim]
    b_qkv = jnp.concatenate([bq, bk, bv]).reshape(1, 3 * dim)    # [1, 3*dim]
    w_o = params["wo"].T                                         # [dim, dim]
    b_o = params["bo"].reshape(1, dim)                           # [1, dim]
    return (w_qkv.astype(compute_dtype), b_qkv.astype(jnp.float32),
            w_o.astype(compute_dtype), b_o.astype(jnp.float32))


# ------------------------------- wrappers ----------------------------------- #
def mha_pallas_batched(x, attn_mask, params, num_heads,
                       compute_dtype=jnp.bfloat16, graphs_per_step=None):
    """x: [B, N, dim], attn_mask: [B, N, N] -> [B, N, dim]."""
    B, N, dim = x.shape
    H = num_heads
    dh = dim // H

    if graphs_per_step is None:
        # Fold as many graphs as possible per step while keeping >=2 grid steps so that
        # v7x's two TensorCores both get work (v5e/v6e would also be fine with one step).
        graphs_per_step = B
        for cand in range(B // 2, 0, -1):
            if B % cand == 0:
                graphs_per_step = cand
                break
    bb = graphs_per_step
    assert B % bb == 0, "batch must be divisible by graphs_per_step"
    grid = (B // bb,)

    w_qkv, b_qkv, w_o, b_o = _pack_params(params, dim, compute_dtype)
    x_c = x.astype(compute_dtype)
    mask_c = attn_mask.astype(compute_dtype)   # upcast to f32 inside the kernel

    kernel = partial(_mha_kernel, num_heads=num_heads, compute_dtype=compute_dtype)

    itemsize = jnp.dtype(compute_dtype).itemsize
    flops = int(2 * B * N * dim * 3 * dim          # QKV projection
                + 4 * B * H * N * N * dh           # QK^T and PV
                + 2 * B * N * dim * dim)           # output projection
    transcendentals = int(B * H * N * N)           # softmax exps
    bytes_accessed = int(B * (N * dim * itemsize + N * N * itemsize + N * dim * 4)
                         + (dim * 3 * dim + dim * dim) * itemsize
                         + (3 * dim + dim) * 4)

    grid_spec = pltpu.PrefetchScalarGridSpec(
        num_scalar_prefetch=0,
        grid=grid,
        in_specs=[
            pl.BlockSpec((bb, N, dim), lambda g: (g, 0, 0)),      # x      (bb graphs / step)
            pl.BlockSpec((bb, N, N), lambda g: (g, 0, 0)),        # mask   (bb graphs / step)
            pl.BlockSpec((dim, 3 * dim), lambda g: (0, 0)),       # W_qkv  (resident)
            pl.BlockSpec((1, 3 * dim), lambda g: (0, 0)),         # b_qkv  (resident)
            pl.BlockSpec((dim, dim), lambda g: (0, 0)),           # W_out  (resident)
            pl.BlockSpec((1, dim), lambda g: (0, 0)),             # b_out  (resident)
        ],
        out_specs=pl.BlockSpec((bb, N, dim), lambda g: (g, 0, 0)),
    )
    return pl.pallas_call(
        kernel,
        out_shape=jax.ShapeDtypeStruct((B, N, dim), jnp.float32),
        grid_spec=grid_spec,
        compiler_params=pltpu.CompilerParams(
            dimension_semantics=("parallel",),
            vmem_limit_bytes=32 * 1024 * 1024),
        cost_estimate=pl.CostEstimate(flops=flops,
                                      transcendentals=transcendentals,
                                      bytes_accessed=bytes_accessed),
    )(x_c, mask_c, w_qkv, b_qkv, w_o, b_o)


def mha_pallas(x, attn_mask, params, num_heads, compute_dtype=jnp.bfloat16):
    """Single graph wrapper matching the module forward: [N, dim] -> [N, dim]."""
    # TODO(synk): the module's empty-graph early-return (num_nodes==0 / no edges) is glue
    #             handled by the caller; not expressed in the kernel.
    out = mha_pallas_batched(x[None], attn_mask[None], params, num_heads,
                             compute_dtype=compute_dtype, graphs_per_step=1)
    return out[0]


# ------------------------------- JAX glue ----------------------------------- #
def build_attn_mask(num_nodes, edge_index, edge_type, edge_type_weights):
    """Replicates the PyTorch edge-mask construction (additive float mask)."""
    w = jax.nn.softplus(edge_type_weights)                      # [num_edge_types]
    mask = jnp.full((num_nodes, num_nodes), NEG_INF, dtype=jnp.float32)
    src, dst = edge_index[0], edge_index[1]
    if edge_type is not None:
        vals = w[edge_type - 1]
    else:
        vals = jnp.ones(src.shape, dtype=jnp.float32)
    mask = mask.at[src, dst].set(vals)
    # self-loops: only where the diagonal is still "blocked"
    diag = jnp.diagonal(mask)
    if edge_type is not None:
        self_val = w[min(3, edge_type_weights.shape[0] - 1)]    # module hardcodes index 3
    else:
        self_val = jnp.float32(1.0)
    new_diag = jnp.where(diag <= NEG_INF * 0.5, self_val, diag)
    idx = jnp.arange(num_nodes)
    return mask.at[idx, idx].set(new_diag)


def reference_forward(x, attn_mask, params, num_heads):
    """Pure-JAX f32 reference with the ORIGINAL (unfolded) parameters."""
    def lin(inp, w, b):
        return inp @ w.T + b
    q = lin(lin(x, params["wq1"], params["bq1"]), params["wqi"], params["bqi"])
    k = lin(lin(x, params["wk1"], params["bk1"]), params["wki"], params["bki"])
    v = lin(lin(x, params["wv1"], params["bv1"]), params["wvi"], params["bvi"])
    N, dim = x.shape
    dh = dim // num_heads
    qh = q.reshape(N, num_heads, dh).transpose(1, 0, 2)
    kh = k.reshape(N, num_heads, dh).transpose(1, 0, 2)
    vh = v.reshape(N, num_heads, dh).transpose(1, 0, 2)
    s = jnp.einsum("hnd,hmd->hnm", qh, kh) / math.sqrt(dh) + attn_mask[None]
    p = jax.nn.softmax(s, axis=-1)
    o = jnp.einsum("hnm,hmd->hnd", p, vh).transpose(1, 0, 2).reshape(N, dim)
    return o @ params["wo"].T + params["bo"]


# --------------------------------- main -------------------------------------- #
if __name__ == "__main__":
    N, dim, num_heads = 8, 32, 4
    num_edges, num_edge_types = 12, 4
    B = 4

    key = jax.random.PRNGKey(0)
    keys = jax.random.split(key, 32)

    def init(k, shape, scale=0.1):
        return jax.random.normal(k, shape, dtype=jnp.float32) * scale

    # Deterministic synthetic parameters (shapes follow the nn.Module __init__).
    params = {
        "wq1": init(keys[0], (dim, dim)), "bq1": init(keys[1], (dim,)),
        "wk1": init(keys[2], (dim, dim)), "bk1": init(keys[3], (dim,)),
        "wv1": init(keys[4], (dim, dim)), "bv1": init(keys[5], (dim,)),
        # nn.MultiheadAttention in_proj_weight slices + in_proj_bias slices
        "wqi": init(keys[6], (dim, dim)), "bqi": init(keys[7], (dim,)),
        "wki": init(keys[8], (dim, dim)), "bki": init(keys[9], (dim,)),
        "wvi": init(keys[10], (dim, dim)), "bvi": init(keys[11], (dim,)),
        # out_proj
        "wo": init(keys[12], (dim, dim)), "bo": init(keys[13], (dim,)),
    }
    edge_type_weights = jnp.ones((num_edge_types,), dtype=jnp.float32)

    # Build B independent graphs (distinct (src, dst) pairs -> no duplicate-edge ambiguity).
    xs, masks = [], []
    for g in range(B):
        kx, ke, kt = jax.random.split(keys[20 + g], 3)
        xg = jax.random.normal(kx, (N, dim), dtype=jnp.float32)
        flat = jax.random.choice(ke, N * N, shape=(num_edges,), replace=False)
        edge_index = jnp.stack([flat // N, flat % N]).astype(jnp.int32)       # [2, E]
        edge_type = jax.random.randint(kt, (num_edges,), 1,
                                       num_edge_types + 1, dtype=jnp.int32)   # [E]
        xs.append(xg)
        masks.append(build_attn_mask(N, edge_index, edge_type, edge_type_weights))
    x_b = jnp.stack(xs)        # [B, N, dim]
    mask_b = jnp.stack(masks)  # [B, N, N]

    refs = jnp.stack([reference_forward(xs[g], masks[g], params, num_heads)
                      for g in range(B)])

    # 1) batched bf16 (default) run: grid=(B//bb,), bb graphs per step, weights resident
    out_bf16 = jax.block_until_ready(mha_pallas_batched(x_b, mask_b, params, num_heads))
    assert out_bf16.shape == (B, N, dim)
    assert jnp.allclose(out_bf16, refs, atol=3e-2, rtol=3e-2), "bf16 batched kernel mismatch"

    # 2) batched f32 run (tighter tolerance)
    out_f32 = jax.block_until_ready(
        mha_pallas_batched(x_b, mask_b, params, num_heads, compute_dtype=jnp.float32))
    assert jnp.allclose(out_f32, refs, atol=5e-3, rtol=5e-3), "f32 batched kernel mismatch"

    # 3) single-graph API (module-equivalent forward), f32
    out1 = jax.block_until_ready(
        mha_pallas(xs[0], masks[0], params, num_heads, compute_dtype=jnp.float32))
    assert out1.shape == (N, dim)
    assert jnp.allclose(out1, refs[0], atol=5e-3, rtol=5e-3), "single-graph kernel mismatch"

    print("KERNEL_OK")
</pallas_src>

<mosaic_0001>
module attributes {stable_mosaic.version = 11 : i64} {
  func.func @_mha_kernel(%arg0: i32, %arg1: memref<2x8x32xbf16, #tpu.memory_space<vmem>>, %arg2: memref<2x8x8xbf16, #tpu.memory_space<vmem>>, %arg3: memref<32x96xbf16, #tpu.memory_space<vmem>>, %arg4: memref<1x96xf32, #tpu.memory_space<vmem>>, %arg5: memref<32x32xbf16, #tpu.memory_space<vmem>>, %arg6: memref<1x32xf32, #tpu.memory_space<vmem>>, %arg7: memref<2x8x32xf32, #tpu.memory_space<vmem>>) attributes {dimension_semantics = [#tpu.dimension_semantics<parallel>], iteration_bounds = array<i64: 2>, scalar_prefetch = 0 : i64, scratch_operands = 0 : i64, tpu.core_type = #tpu.core_type<tc>, window_params = [{transform_indices = @transform_0, window_bounds = array<i64: 2, 8, 32>}, {transform_indices = @transform_1, window_bounds = array<i64: 2, 8, 8>}, {pipeline_mode = #tpu.pipeline_mode<synchronous>, transform_indices = @transform_2, window_bounds = array<i64: 32, 96>}, {pipeline_mode = #tpu.pipeline_mode<synchronous>, transform_indices = @transform_3, window_bounds = array<i64: 1, 96>}, {pipeline_mode = #tpu.pipeline_mode<synchronous>, transform_indices = @transform_4, window_bounds = array<i64: 32, 32>}, {pipeline_mode = #tpu.pipeline_mode<synchronous>, transform_indices = @transform_5, window_bounds = array<i64: 1, 32>}, {transform_indices = @transform_6, window_bounds = array<i64: 2, 8, 32>}]} {
    %c0 = arith.constant 0 : index
    %c0_0 = arith.constant 0 : index
    %c0_1 = arith.constant 0 : index
    %0 = vector.load %arg1[%c0, %c0_0, %c0_1] : memref<2x8x32xbf16, #tpu.memory_space<vmem>>, vector<2x8x32xbf16>
    %1 = vector.shape_cast %0 : vector<2x8x32xbf16> to vector<16x32xbf16>
    %c0_2 = arith.constant 0 : index
    %c0_3 = arith.constant 0 : index
    %2 = vector.load %arg3[%c0_2, %c0_3] : memref<32x96xbf16, #tpu.memory_space<vmem>>, vector<32x96xbf16>
    %cst = arith.constant dense<0.000000e+00> : vector<16x96xf32>
    %3 = tpu.matmul %1, %2, %cst {dimension_numbers = #tpu.dot_dimension_numbers<[1], [0], [0], [1], [0, 0, 1, 1], [], []>} : vector<16x32xbf16>, vector<32x96xbf16>, vector<16x96xf32> -> vector<16x96xf32>
    %c0_4 = arith.constant 0 : index
    %c0_5 = arith.constant 0 : index
    %4 = vector.load %arg4[%c0_4, %c0_5] : memref<1x96xf32, #tpu.memory_space<vmem>>, vector<1x96xf32>
    %5 = vector.broadcast %4 : vector<1x96xf32> to vector<16x96xf32>
    %6 = arith.addf %3, %5 : vector<16x96xf32>
    %7 = vector.extract_strided_slice %6 {offsets = [0, 0], sizes = [16, 32], strides = [1, 1]} : vector<16x96xf32> to vector<16x32xf32>
    %8 = vector.shape_cast %7 : vector<16x32xf32> to vector<2x8x4x8xf32>
    %9 = tpu.transpose %8, [0, 2, 1, 3] : vector<2x8x4x8xf32> -> vector<2x4x8x8xf32>
    %10 = vector.shape_cast %9 : vector<2x4x8x8xf32> to vector<8x8x8xf32>
    %11 = arith.truncf %10 : vector<8x8x8xf32> to vector<8x8x8xbf16>
    %12 = vector.extract_strided_slice %6 {offsets = [0, 32], sizes = [16, 32], strides = [1, 1]} : vector<16x96xf32> to vector<16x32xf32>
    %13 = vector.shape_cast %12 : vector<16x32xf32> to vector<2x8x4x8xf32>
    %14 = tpu.transpose %13, [0, 2, 1, 3] : vector<2x8x4x8xf32> -> vector<2x4x8x8xf32>
    %15 = vector.shape_cast %14 : vector<2x4x8x8xf32> to vector<8x8x8xf32>
    %16 = arith.truncf %15 : vector<8x8x8xf32> to vector<8x8x8xbf16>
    %17 = vector.extract_strided_slice %6 {offsets = [0, 64], sizes = [16, 32], strides = [1, 1]} : vector<16x96xf32> to vector<16x32xf32>
    %18 = vector.shape_cast %17 : vector<16x32xf32> to vector<2x8x4x8xf32>
    %19 = tpu.transpose %18, [0, 2, 1, 3] : vector<2x8x4x8xf32> -> vector<2x4x8x8xf32>
    %20 = vector.shape_cast %19 : vector<2x4x8x8xf32> to vector<8x8x8xf32>
    %21 = arith.truncf %20 : vector<8x8x8xf32> to vector<8x8x8xbf16>
    %c0_6 = arith.constant 0 : index
    %c0_7 = arith.constant 0 : index
    %c0_8 = arith.constant 0 : index
    %22 = vector.load %arg2[%c0_6, %c0_7, %c0_8] : memref<2x8x8xbf16, #tpu.memory_space<vmem>>, vector<2x8x8xbf16>
    %23 = arith.extf %22 : vector<2x8x8xbf16> to vector<2x8x8xf32>
    %24 = vector.shape_cast %23 : vector<2x8x8xf32> to vector<2x1x8x8xf32>
    %25 = vector.shape_cast %24 : vector<2x1x8x8xf32> to vector<2x1x8x8xf32>
    %26 = vector.broadcast %25 : vector<2x1x8x8xf32> to vector<2x4x8x8xf32>
    %27 = vector.shape_cast %26 : vector<2x4x8x8xf32> to vector<8x8x8xf32>
    "tpu.trace_start"() <{level = 10 : i32, message = "gnd,gmd->gnm"}> : () -> ()
    %cst_9 = arith.constant dense<0.000000e+00> : vector<8x8x8xf32>
    %28 = tpu.matmul %11, %16, %cst_9 {dimension_numbers = #tpu.dot_dimension_numbers<[2], [2], [1], [1], [0, 0, 0, 1, 1, 1], [0], [0]>} : vector<8x8x8xbf16>, vector<8x8x8xbf16>, vector<8x8x8xf32> -> vector<8x8x8xf32>
    "tpu.trace_stop"() : () -> ()
    %cst_10 = arith.constant 0.353553385 : f32
    %29 = vector.broadcast %cst_10 : f32 to vector<8x8x8xf32>
    %30 = arith.mulf %28, %29 : vector<8x8x8xf32>
    %31 = arith.addf %30, %27 : vector<8x8x8xf32>
    %cst_11 = arith.constant dense<0xFF800000> : vector<8x8xf32>
    %32 = vector.multi_reduction <maximumf>, %31, %cst_11 [2] : vector<8x8x8xf32> to vector<8x8xf32>
    %33 = vector.shape_cast %32 : vector<8x8xf32> to vector<8x8x1xf32>
    %34 = vector.broadcast %33 : vector<8x8x1xf32> to vector<8x8x8xf32>
    %35 = arith.subf %31, %34 : vector<8x8x8xf32>
    %36 = math.exp %35 : vector<8x8x8xf32>
    %cst_12 = arith.constant dense<0.000000e+00> : vector<8x8xf32>
    %37 = vector.multi_reduction <add>, %36, %cst_12 [2] : vector<8x8x8xf32> to vector<8x8xf32>
    %38 = vector.shape_cast %37 : vector<8x8xf32> to vector<8x8x1xf32>
    %39 = tpu.reciprocal %38 {approx = true} : vector<8x8x1xf32> -> vector<8x8x1xf32>
    %40 = vector.broadcast %39 : vector<8x8x1xf32> to vector<8x8x8xf32>
    %41 = arith.mulf %36, %40 : vector<8x8x8xf32>
    %42 = arith.truncf %41 : vector<8x8x8xf32> to vector<8x8x8xbf16>
    "tpu.trace_start"() <{level = 10 : i32, message = "gnm,gmd->gnd"}> : () -> ()
    %cst_13 = arith.constant dense<0.000000e+00> : vector<8x8x8xf32>
    %43 = tpu.matmul %42, %21, %cst_13 {dimension_numbers = #tpu.dot_dimension_numbers<[2], [1], [1], [2], [0, 0, 0, 1, 1, 2], [0], [0]>} : vector<8x8x8xbf16>, vector<8x8x8xbf16>, vector<8x8x8xf32> -> vector<8x8x8xf32>
    "tpu.trace_stop"() : () -> ()
    %44 = vector.shape_cast %43 : vector<8x8x8xf32> to vector<2x4x8x8xf32>
    %45 = tpu.transpose %44, [0, 2, 1, 3] : vector<2x4x8x8xf32> -> vector<2x8x4x8xf32>
    %46 = vector.shape_cast %45 : vector<2x8x4x8xf32> to vector<16x32xf32>
    %47 = arith.truncf %46 : vector<16x32xf32> to vector<16x32xbf16>
    %c0_14 = arith.constant 0 : index
    %c0_15 = arith.constant 0 : index
    %48 = vector.load %arg5[%c0_14, %c0_15] : memref<32x32xbf16, #tpu.memory_space<vmem>>, vector<32x32xbf16>
    %cst_16 = arith.constant dense<0.000000e+00> : vector<16x32xf32>
    %49 = tpu.matmul %47, %48, %cst_16 {dimension_numbers = #tpu.dot_dimension_numbers<[1], [0], [0], [1], [0, 0, 1, 1], [], []>} : vector<16x32xbf16>, vector<32x32xbf16>, vector<16x32xf32> -> vector<16x32xf32>
    %c0_17 = arith.constant 0 : index
    %c0_18 = arith.constant 0 : index
    %50 = vector.load %arg6[%c0_17, %c0_18] : memref<1x32xf32, #tpu.memory_space<vmem>>, vector<1x32xf32>
    %51 = vector.broadcast %50 : vector<1x32xf32> to vector<16x32xf32>
    %52 = arith.addf %49, %51 : vector<16x32xf32>
    %53 = vector.shape_cast %52 : vector<16x32xf32> to vector<2x8x32xf32>
    %c0_19 = arith.constant 0 : index
    %c0_20 = arith.constant 0 : index
    %c0_21 = arith.constant 0 : index
    %54 = vector.load %arg7[%c0_19, %c0_20, %c0_21] : memref<2x8x32xf32, #tpu.memory_space<vmem>>, vector<2x8x32xf32>
    tpu.vector_store %arg7[%c0_19, %c0_20, %c0_21], %53 {strides = array<i32>} : memref<2x8x32xf32, #tpu.memory_space<vmem>>, vector<2x8x32xf32>,
    return
  }
  func.func @transform_0(%arg0: i32) -> (i32, i32, i32) {
    %c0_i32 = arith.constant 0 : i32
    %c0_i32_0 = arith.constant 0 : i32
    %c0_i32_1 = arith.constant 0 : i32
    return %arg0, %c0_i32, %c0_i32_0 : i32, i32, i32
  }
  func.func @transform_1(%arg0: i32) -> (i32, i32, i32) {
    %c0_i32 = arith.constant 0 : i32
    %c0_i32_0 = arith.constant 0 : i32
    %c0_i32_1 = arith.constant 0 : i32
    return %arg0, %c0_i32, %c0_i32_0 : i32, i32, i32
  }
  func.func @transform_2(%arg0: i32) -> (i32, i32) {
    %c0_i32 = arith.constant 0 : i32
    %c0_i32_0 = arith.constant 0 : i32
    %c0_i32_1 = arith.constant 0 : i32
    return %c0_i32, %c0_i32_0 : i32, i32
  }
  func.func @transform_3(%arg0: i32) -> (i32, i32) {
    %c0_i32 = arith.constant 0 : i32
    %c0_i32_0 = arith.constant 0 : i32
    %c0_i32_1 = arith.constant 0 : i32
    return %c0_i32, %c0_i32_0 : i32, i32
  }
  func.func @transform_4(%arg0: i32) -> (i32, i32) {
    %c0_i32 = arith.constant 0 : i32
    %c0_i32_0 = arith.constant 0 : i32
    %c0_i32_1 = arith.constant 0 : i32
    return %c0_i32, %c0_i32_0 : i32, i32
  }
  func.func @transform_5(%arg0: i32) -> (i32, i32) {
    %c0_i32 = arith.constant 0 : i32
    %c0_i32_0 = arith.constant 0 : i32
    %c0_i32_1 = arith.constant 0 : i32
    return %c0_i32, %c0_i32_0 : i32, i32
  }
  func.func @transform_6(%arg0: i32) -> (i32, i32, i32) {
    %c0_i32 = arith.constant 0 : i32
    %c0_i32_0 = arith.constant 0 : i32
    %c0_i32_1 = arith.constant 0 : i32
    return %arg0, %c0_i32, %c0_i32_0 : i32, i32, i32
  }
}

</mosaic_0001>

<bundles_post_ra>
// kernel: tpu_custom_call.1
= control target key start
LH: loop header
LB: loop body
LE: loop exit
PB: predicated region body
PF: predicated region fallthrough
CT: control target
= control target key end

     0   :  { %s4003_s0 = inlined_call_operand.hbm [shape: bf16[4,8,32], index: 0, kind: input, shape index: {}]   ;;  %s4004_s1 = inlined_call_operand.hbm [shape: bf16[4,8,8], index: 1, kind: input, shape index: {}]   ;;  %s4005_s2 = inlined_call_operand.hbm [shape: bf16[32,96], index: 2, kind: input, shape index: {}]   ;;  %s4006_s3 = inlined_call_operand.vmem [shape: f32[1,96], index: 3, kind: input, shape index: {}]   ;;  %s4007_s4 = inlined_call_operand.hbm [shape: bf16[32,32], index: 4, kind: input, shape index: {}]   ;;  %s4008_s5 = inlined_call_operand.vmem [shape: f32[1,32], index: 5, kind: input, shape index: {}]   ;;  %s4009_s6 = inlined_call_operand.hbm [shape: f32[4,8,32], index: 6, kind: output, shape index: {}]  }
   0x1   :  { %4017 = sst [smem:[#allocation16_spill]] %s4003_s0 }
   0x2   :  { %4018 = sst [smem:[#allocation17_spill]] %s4005_s2 }
   0x3   :  { %4019 = sst [smem:[#allocation18_spill]] %s4007_s4 }
   0x4   :  { %11 = vsyncpa [#allocation3], 0 }
   0x5   :  { %13 = vsyncpa [#allocation3 + $0x1], 0 }
   0x6   :  { %14 = vsyncpa [#allocation6], 0 }
   0x7   :  { %16 = vsyncpa [#allocation6 + $0x1], 0 }
   0x8   :  { %17 = vsyncpa [#allocation9], 0 }
   0x9   :  { %18 = vsyncpa [#allocation4], 0 }
   0xa   :  { %20 = vsyncpa [#allocation4 + $0x1], 0  ;;  %s3293_s21 = smov 0   ;;  %s3295_s22 = smov 0  }
   0xb   :  { %s3297_s23 = smov 0   ;;  %s3299_s24 = smov 0  }
   0xc LB: > { %s3314_s25 = sadd.s32 4294967295, %s3236_s24   ;;  %s2683_s26 = sadd.s32 4294967294, %s3236_s24   ;;  %s3236_s24 = sphi %s3299_s24, %s4043_s24   ;;  %s3232_s23 = sphi %s3297_s23, %s4042_s23   ;;  %s3228_s22 = sphi %s3295_s22, %s4041_s22   ;;  %s3224_s21 = sphi %s3293_s21, %s4040_s21  }
   0xd   : > { %p46_p0 = scmp.ne.s32.totalorder %s3228_s22, %s3224_s21  ;;  %p4010_p1 = scmp.eq.s32.totalorder %s3314_s25, 0 }
   0xe   : > { %p186_p3 = scmp.eq.s32.totalorder %s2683_s26, 1  ;;  %p2684_p5 = scmp.ge.s32.totalorder %s3236_s24, 1 }
   0xf   : > { %p3323_p4 = por %p4010_p1, %p46_p0  ;;  %p193_p7 = scmp.lt.s32.totalorder %s3236_s24, 3 }
  0x10   : > { %p3328_p6 = por %p186_p3, %p46_p0  ;;  %s3238_s30 = smov [#allocation7]  }
  0x11   : > { %s4020_s27 = scalar_select %p3323_p4, 1, 0 }
  0x12   : > { %s4021_s28 = scalar_select %p3328_p6, 1, 0 }
  0x13   : > { %p3333_p8 = pnand %p2684_p5, %p193_p7  ;;  %s205_s7 = sshll.u32 %s3238_s30, 4  ;;  %s3337_s7 = int_to_ptr.vmem [resolvable:$true] %s205_s7 }
  0x14   : > { %s3239_s9 = smov [#allocation8]   ;;  %s4024_s2 = sld [smem:[#allocation17_spill]] }
  0x15   : > { %p2917_p9 = pneg %p3333_p8  ;;  %s221_s10 = sshll.u32 %s3239_s9, 4  ;;  %s3348_s10 = int_to_ptr.vmem [resolvable:$true] %s221_s10 }
  0x17   : > { %p3344_p11 = pnand %p2917_p9, %p4010_p1 }
  0x19   : > { %p3044_p13 = pneg %p3344_p11 }
  0x1a   : > { %s3042_s13 = scalar_lea.hbm %s4024_s2, 256 }
  0x1b   : > { %p3043_p12 = scmp.ne.s32.totalorder %s4024_s2, %s3042_s13  ;;  %p3049_p5 = scmp.lt.u32.totalorder %s3042_s13, %s4024_s2 }
  0x1d   : > { %p3045_p0 = pnand %p3044_p13, %p3043_p12 }
  0x1f   : > { %p3046_p3 = pneg %p3045_p0 }
  0x21   : > { %p3051_p7 = pnand %p3049_p5, %p3046_p3 }
  0x23   : > { %3054 = shalt.err (!%p3051_p7)
}
  0x24   : > { %s3055_s18 = scalar_lea.vmem %s3337_s7, 256  ;;  %p3063_p2 = scmp.lt.s32.totalorder %s3337_s7, %s3337_s7 }
  0x25   : > { %p3056_p9 = scmp.ne.s32.totalorder %s3337_s7, %s3055_s18  ;;  %p3064_p12 = scmp.lt.s32.totalorder %s3055_s18, %s3055_s18 }
  0x27   : > { %p3058_p10 = pnand %p3056_p9, %p3044_p13  ;;  %p3065_p0 = por %p3064_p12, %p3063_p2 }
  0x29   : > { %p3059_p1 = pneg %p3058_p10 }
  0x2b   : > { %p3066_p6 = pnand %p3065_p0, %p3059_p1 }
  0x2d   : > { %3069 = shalt.err (!%p3066_p6)
}
  0x2e   : > { %s4011_s19 = smov 64   ;;  %s4013_s20 = smov 4  }
  0x2f   : > { %2920 = dma.hbm_to_vmem [thread:$0]  (!%p3344_p11), %s4024_s2, 256, %s3337_s7, [#allocation6], %s4011_s19, %s4011_s19, %s4013_s20  }
  0x30   : > { %s4025_s4 = sld [smem:[#allocation18_spill]] }
  0x36   : > { %s3070_s12 = scalar_lea.hbm %s4025_s4, 256 }
  0x37   : > { %p3071_p1 = scmp.ne.s32.totalorder %s4025_s4, %s3070_s12  ;;  %p3077_p10 = scmp.lt.u32.totalorder %s3070_s12, %s4025_s4 }
  0x39   : > { %p3073_p2 = pnand %p3071_p1, %p3044_p13 }
  0x3b   : > { %p3074_p6 = pneg %p3073_p2 }
  0x3d   : > { %p3079_p3 = pnand %p3077_p10, %p3074_p6 }
  0x3f   : > { %3082 = shalt.err (!%p3079_p3)
}
  0x40   : > { %s3083_s7 = scalar_lea.vmem %s3348_s10, 256  ;;  %p3091_p12 = scmp.lt.s32.totalorder %s3348_s10, %s3348_s10 }
  0x41   : > { %p3084_p5 = scmp.ne.s32.totalorder %s3348_s10, %s3083_s7  ;;  %p3092_p0 = scmp.lt.s32.totalorder %s3083_s7, %s3083_s7 }
  0x43   : > { %p3086_p7 = pnand %p3084_p5, %p3044_p13  ;;  %p3093_p1 = por %p3092_p0, %p3091_p12 }
  0x45   : > { %p3087_p9 = pneg %p3086_p7 }
  0x47   : > { %p3094_p2 = pnand %p3093_p1, %p3087_p9 }
  0x49   : > { %3097 = shalt.err (!%p3094_p2)
}
  0x4a   : > { %2923 = dma.hbm_to_vmem [thread:$0]  (!%p3344_p11), %s4025_s4, 256, %s3348_s10, [#allocation9], %s4011_s19, %s4011_s19, %s4013_s20  }
  0x4b   : > { %s3409_s8 = sadd.s32 1, %s3236_s24   ;;  %s33_s26 = sadd.s32 1, %s3232_s23 }
  0x4c   : > { %s30_s30 = ssub.s32 %s3236_s24, %s3409_s8  ;;  %p40_p13 = scmp.ne.s32.totalorder %s3232_s23, %s3228_s22 }
  0x4d   : > { %p31_p6 = scmp.eq.s32.totalorder %s30_s30, 0  ;;  %p41_p10 = scmp.eq.s32.totalorder %s3236_s24, 0 }
  0x4e   : > { %p4026_p3 = scmp.eq.s32.totalorder %s3314_s25, 1  ;;  %p2937_p7 = scmp.lt.s32.totalorder %s3236_s24, 2 }
  0x4f   : > { %s3425_s11 = scalar_select %p31_p6, %s3232_s23, %s33_s26  }
  0x50   : > { %p3419_p5 = por %p4026_p3, %p40_p13  ;;  %p42_p9 = por %p41_p10, %p40_p13 }
  0x51   : > { %s238_s12 = sand.u32 1, %s3232_s23   ;;  %s2746_s10 = sshll.u32 %s3236_s24, 7 }
  0x52   : > { %s4027_s9 = scalar_select %p3419_p5, 1, 0 }
  0x53   : > { %s2688_s13 = sshll.u32 %s238_s12, 3  ;;  %s4028_s0 = sld [smem:[#allocation16_spill]] }
  0x54   : > { %s242_s7 = scalar_lea.vmem [#allocation2], %s2688_s13  ;;  %p3436_p11 = pnand %p2937_p7, %p42_p9 }
  0x55   : > { %s249_s17 = sshll.u32 %s242_s7, 4  ;;  %s3443_s14 = scalar_lea.hbm %s4004_s1, %s2746_s10  ;;  %s3434_s17 = int_to_ptr.vmem [resolvable:$true] %s249_s17 }
  0x56   : > { %s263_s15 = scalar_lea.vmem [#allocation5], %s2688_s13  ;;  %s3447_s20 = scalar_lea.sflag [#allocation3], %s238_s12 }
  0x57   : > { %s3445_s19 = sshll.u32 %s263_s15, 4  ;;  %p3100_p0 = pneg %p3436_p11  ;;  %s3479_s19 = int_to_ptr.vmem [resolvable:$true] %s3445_s19 }
  0x59   : > { %s3432_s16 = scalar_lea.hbm %s4028_s0, %s2746_s10  ;;  %s3103_s26 = scalar_lea.hbm %s4028_s0, 256 }
  0x5a   : > { %s3098_s7 = scalar_lea.hbm %s3432_s16, 128  ;;  %p3104_p13 = scmp.lt.u32.totalorder %s3432_s16, %s4028_s0 }
  0x5b   : > { %p3099_p12 = scmp.ne.s32.totalorder %s3432_s16, %s3098_s7  ;;  %p3105_p6 = scmp.lt.u32.totalorder %s3103_s26, %s3098_s7 }
  0x5c   : > { %p3107_p3 = scmp.lt.u32.totalorder %s3098_s7, %s3432_s16 }
  0x5d   : > { %p3101_p1 = pnand %p3100_p0, %p3099_p12  ;;  %p3106_p10 = por %p3105_p6, %p3104_p13 }
  0x5f   : > { %p3102_p2 = pneg %p3101_p1  ;;  %p3108_p7 = por %p3107_p3, %p3106_p10 }
  0x61   : > { %p3109_p9 = pnand %p3108_p7, %p3102_p2 }
  0x63   : > { %3112 = shalt.err (!%p3109_p9)
}
  0x64   : > { %s3113_s12 = scalar_lea.vmem %s3434_s17, 128  ;;  %s3242_s2 = smov [#allocation2]  }
  0x65   : > { %p3114_p12 = scmp.ne.s32.totalorder %s3434_s17, %s3113_s12  ;;  %s3118_s4 = sshll.u32 %s3242_s2, 4  ;;  %s3119_s4 = int_to_ptr.vmem [resolvable:$false] %s3118_s4 }
  0x66   : > { %s3120_s13 = scalar_lea.vmem %s3119_s4, 256  ;;  %p3121_p4 = scmp.lt.s32.totalorder %s3434_s17, %s3119_s4 }
  0x67   : > { %p3116_p1 = pnand %p3114_p12, %p3100_p0  ;;  %p3122_p13 = scmp.lt.s32.totalorder %s3120_s13, %s3113_s12 }
  0x69   : > { %p3117_p5 = pneg %p3116_p1  ;;  %p3123_p6 = por %p3122_p13, %p3121_p4 }
  0x6b   : > { %p3124_p10 = pnand %p3123_p6, %p3117_p5 }
  0x6d   : > { %3127 = shalt.err (!%p3124_p10)
}
  0x6e   : > { %s4030_s15 = smov 4   ;;  %s4031_s7 = smov 64  }
  0x6f   : > { %2927 = dma.hbm_to_vmem [thread:$0]  (!%p3436_p11), %s3432_s16, 128, %s3434_s17, %s3447_s20, %s4031_s7, %s4031_s7, %s4030_s15  }
  0x70   : > { %s259_s26 = sand.u32 1, %s3236_s24   ;;  %s3128_s10 = scalar_lea.hbm %s3443_s14, 128 }
  0x71   : > { %s3482_s30 = scalar_lea.sflag [#allocation6], %s259_s26  ;;  %p3129_p4 = scmp.ne.s32.totalorder %s3443_s14, %s3128_s10 }
  0x72   : > { %s3133_s4 = scalar_lea.hbm %s4004_s1, 256  ;;  %p3134_p3 = scmp.lt.u32.totalorder %s3443_s14, %s4004_s1 }
  0x73   : > { %p3131_p5 = pnand %p3129_p4, %p3100_p0  ;;  %p3135_p7 = scmp.lt.u32.totalorder %s3133_s4, %s3128_s10 }
  0x74   : > { %p3137_p12 = scmp.lt.u32.totalorder %s3128_s10, %s3443_s14 }
  0x75   : > { %p3132_p2 = pneg %p3131_p5  ;;  %p3136_p9 = por %p3135_p7, %p3134_p3 }
  0x77   : > { %p3138_p1 = por %p3137_p12, %p3136_p9 }
  0x79   : > { %p3139_p13 = pnand %p3138_p1, %p3132_p2 }
  0x7b   : > { %3142 = shalt.err (!%p3139_p13)
}
  0x7c   : > { %s3143_s20 = scalar_lea.vmem %s3479_s19, 128  ;;  %s3243_s16 = smov [#allocation5]  }
  0x7d   : > { %p3144_p6 = scmp.ne.s32.totalorder %s3479_s19, %s3143_s20  ;;  %s3148_s17 = sshll.u32 %s3243_s16, 4  ;;  %s3149_s17 = int_to_ptr.vmem [resolvable:$false] %s3148_s17 }
  0x7e   : > { %s3150_s0 = scalar_lea.vmem %s3149_s17, 256  ;;  %p3151_p5 = scmp.lt.s32.totalorder %s3479_s19, %s3149_s17 }
  0x7f   : > { %p3146_p10 = pnand %p3144_p6, %p3100_p0  ;;  %p3152_p3 = scmp.lt.s32.totalorder %s3150_s0, %s3143_s20 }
  0x81   : > { %p3147_p4 = pneg %p3146_p10  ;;  %p3153_p7 = por %p3152_p3, %p3151_p5 }
  0x83   : > { %p3154_p9 = pnand %p3153_p7, %p3147_p4 }
  0x85   : > { %3157 = shalt.err (!%p3154_p9)
}
  0x86   : > { %2930 = dma.hbm_to_vmem [thread:$0]  (!%p3436_p11), %s3443_s14, 128, %s3479_s19, %s3482_s30, %s4031_s7, %s4031_s7, %s4030_s15  }
  0x87   : > { %282 = sbr.rel (%p3333_p8) target bundleno = 1830 (0x726), region = 44  ;;  %s3514_s26 = sand.u32 (!%p3333_p8), 1, %s3228_s22  }
  0x88   : > { %s2695_s10 = sshll.u32 (!%p3333_p8), %s3514_s26, 3  ;;  %s285_s12 = scalar_lea.sflag (!%p3333_p8), [#allocation3], %s3514_s26 }
  0x89   : > { %s288_s2 = scalar_lea.vmem (!%p3333_p8), [#allocation2], %s2695_s10  ;;  %p4032_p0 = scmp.ne.s32.totalorder (!%p3333_p8), %s4020_s27, 0 }
  0x8e   : > { %3203 = dma.done.wait (%p4032_p0), %s285_s12, 128  }
  0x8f   : > { %3205 = vsyncadd (%p4032_p0), %s285_s12, 4294967168  ;;  %s293_s19 = sand.u32 1, %s3314_s25   ;;  %s3523_s29 = scalar_lea.vmem [#allocation5], %s2695_s10 }
  0x90   : > { %s294_s18 = scalar_lea.sflag [#allocation6], %s293_s19 }
  0x91   : > { %3207 = dma.done.wait (%p4032_p0), %s294_s18, 128  }
  0x92   : > { %3209 = vsyncadd (%p4032_p0), %s294_s18, 4294967168  ;;  %p4033_p8 = scmp.eq.s32.totalorder %s3314_s25, 0 }
  0x94   : > { %3211 = dma.done.wait (%p4033_p8), [#allocation6], 256   ;;  %p4034_p11 = pmov %p4033_p8 }
  0x95   : > { %p4035_p2 = pmov %p4033_p8 }
  0x96   : > { %3213 = vsyncadd (%p4034_p11), [#allocation6], 4294967040 }
  0x97   : > { %3215 = dma.done.wait (%p4035_p2), [#allocation9], 256   ;;  %p4036_p12 = pmov %p4035_p2 }
  0x98   : > { %v3244_v0 = vmov 0.0   ;;  %vm3245_vm0 = vmmov 0   ;;  %v3005_v1 = vld [vmem:[#allocation7] sm:$0xff]   ;;  %v3006_v2 = vld [vmem:[#allocation7 + $0x8] sm:$0xff]   ;;  %vm373_vm1 = vcmask 261120   ;;  %s3246_s15 = smov 104   ;;  %v443_v19 = vlaneseq }
  0x99   : > { %3217 = vsyncadd (%p4036_p12), [#allocation9], 4294967040  ;;  %2791 = vmatprep.subr.bf16.mxu0 %v3244_v0  ;;  %2795 = vmatprep.mubr.msk.bf16.mxu0 %vm3245_vm0, %v3244_v0  ;;  %v3007_v3 = vld [vmem:[%s288_s2] sm:$0xff]   ;;  %s3247_s7 = smov 120   ;;  %s3248_s30 = smov 112   ;;  %vm1330_vm2 = vcmask 64512  }
  0x9a   : > { %2799 = vmatprep.subr.bf16.mxu1 %v3244_v0  ;;  %2801 = vmatprep.mubr.msk.bf16.mxu1 %vm3245_vm0, %v3244_v0  ;;  %v2700_v4 = vld [vmem:[%s4006_s3] ss:$0 sm:$0xff]  ;;  %s3249_s4 = smov 96   ;;  %s3250_s13 = smov 64   ;;  %v3251_v17 = vmov 1983009808  }
  0x9b   : > { %2792 = vmatpush3.bf16.msra.mxu0 %v3005_v1  ;;  %v441_v18 = vunpack.c.l.s4 %v3251_v17  ;;  %v444_v21 = vshrl.u32 %v443_v19, 7  ;;  %v3252_v22 = vmov 1934713408   ;;  %vm1814_vm3 = vcmask 1043456   ;;  %s3253_s20 = smov 16   ;;  %s3254_s16 = smov 8  }
  0x9c   : > { %2793 = vmatprep.subr.bf16.mxu0 %v3244_v0  ;;  %v473_v23 = vunpack.c.l.s4 %v3252_v22  ;;  %s3255_s17 = smov 24   ;;  %vm2478_vm4 = vcmask 130048   ;;  %vm2481_vm5 = vcmask 195584   ;;  %s2699_s0 = sshll.u32 %s3514_s26, 4 }
  0x9d   : > { %v442_v20 = vunpack.c.0.s8 %v441_v18  ;;  %s338_s2 = scalar_lea.vmem [#allocation10], %s2699_s0  ;;  %s2748_s18 = sshll.u32 %s3314_s25, 8 }
  0x9e   : > { %v474_v29 = vunpack.c.0.s8 %v473_v23  ;;  %s2568_s19 = sshll.u32 %s338_s2, 4  ;;  %s3957_s14 = scalar_lea.hbm %s4009_s6, %s2748_s18  ;;  %s3951_s19 = int_to_ptr.vmem [resolvable:$true] %s2568_s19 }
  0x9f   : > { %2794 = vmatpush3.bf16.msra.mxu0 %v3006_v2  ;;  %v3577_v25 = vsub.s32 %v442_v20, %v444_v21  ;;  %s2555_s25 = scalar_lea.sflag [#allocation4], %s3514_s26  ;;  %p4037_p13 = scmp.ne.s32.totalorder %s4027_s9, 0 }
  0xa0   : > { %2805 = vmatprep.subr.bf16.mxu0 %v3244_v0  ;;  %v3588_v34 = vsub.s32 %v474_v29, %v444_v21 }
  0xa2   : > { %2796 = vmatmul.mubr.msk.bf16.vlgmr.msra.gmra.mrb[0].mxu0 %vm373_vm1, %v3007_v3 }
  0xa3   : > { %2807 = vmatprep.mubr.msk.bf16.mxu0 %vm3245_vm0, %v3244_v0 }
 0x175   : > { %v411_v5 = vpop.f32.mrb[0].mxu0 }
 0x176   : > { %v412_v6 = vadd.f32 %v2700_v4, %v411_v5  ;;  %v2797_v7 = vpop.f32.mrb[1].mxu0 }
 0x177   : > { %v414_v8 = vpop.f32.mrb[2].mxu0 }
 0x178   : > { %432 = vrot.lane.b32.xlu1 %v412_v6, %s3246_s15  ;;  %420 = vrot.lane.b32.xlu0 %v412_v6, %s3247_s7  ;;  %v2798_v9 = vpop.f32.mrb[3].mxu0  ;;  %v3551_v10 = vadd.f32 %v2700_v4, %v414_v8 }
 0x17c   : > { %426 = vrot.lane.b32.xlu0 %v412_v6, %s3248_s30  ;;  %422 = vrot.lane.b32.xlu1 %v3551_v10, %s3247_s7  ;;  %s3256_s7 = smov [#allocation10]  }
 0x180   : > { %428 = vrot.lane.b32.xlu0 %v3551_v10, %s3248_s30  ;;  %434 = vrot.lane.b32.xlu1 %v3551_v10, %s3246_s15  ;;  %s3158_s15 = scalar_lea.vmem %s3951_s19, 256  ;;  %s3162_s30 = sshll.u32 %s3256_s7, 4  ;;  %s3163_s30 = int_to_ptr.vmem [resolvable:$false] %s3162_s30 }
 0x181   : > { %p3159_p1 = scmp.ne.s32.totalorder %s3951_s19, %s3158_s15  ;;  %p3165_p4 = scmp.lt.s32.totalorder %s3951_s19, %s3163_s30 }
 0x183   : > { %p3160_p6 = pnand %p3159_p1, %p4037_p13 }
 0x184   : > { %718 = vrot.lane.b32.xlu0 %v412_v6, %s3249_s4 }
 0x185   : > { %p3161_p10 = pneg %p3160_p6 }
 0x1ea   : > { %v3556_v11 = vpop.permute.xlu0 %420  ;;  %v3558_v12 = vpop.permute.xlu1 %432 }
 0x1eb   : > { %722 = vrot.lane.b32.xlu1 %v3556_v11, %s3249_s4  ;;  %v454_v26 = vcombine.low %v3556_v11, %v3558_v12  ;;  %v455_v28 = vcombine.high %v3556_v11, %v3558_v12 }
 0x1ed   : > { %v462_v31 = vrot.slane %v454_v26, %v3577_v25  ;;  %v469_v33 = vrot.slane %v455_v28, %v3577_v25 }
 0x1ee   : > { %v3561_v13 = vpop.permute.xlu0 %426  ;;  %v3565_v14 = vpop.permute.xlu1 %422 }
 0x1ef   : > { %726 = vrot.lane.b32.xlu0 %v3561_v13, %s3249_s4  ;;  %730 = vrot.lane.b32.xlu1 %v3558_v12, %s3249_s4  ;;  %v438_v24 = vcombine.low %v412_v6, %v3561_v13  ;;  %v439_v27 = vcombine.high %v412_v6, %v3561_v13 }
 0x1f1   : > { %v446_v30 = vrot.slane %v438_v24, %v3577_v25  ;;  %v453_v32 = vrot.slane %v439_v27, %v3577_v25 }
 0x1f2   : > { %v3569_v15 = vpop.permute.xlu0 %428  ;;  %v3571_v16 = vpop.permute.xlu1 %434 }
 0x1f3   : > { %720 = vrot.lane.b32.xlu0 %v3551_v10, %s3249_s4  ;;  %724 = vrot.lane.b32.xlu1 %v3565_v14, %s3249_s4  ;;  %v470_v35 = vcombine.low %v446_v30, %v462_v31  ;;  %v471_v36 = vcombine.high %v446_v30, %v462_v31  ;;  %v486_v37 = vcombine.low %v453_v32, %v469_v33 }
 0x1f4   : > { %v487_v38 = vcombine.high %v453_v32, %v469_v33  ;;  %v506_v39 = vcombine.low %v3551_v10, %v3569_v15  ;;  %v522_v40 = vcombine.low %v3565_v14, %v3571_v16  ;;  %v507_v43 = vcombine.high %v3551_v10, %v3569_v15 }
 0x1f5   : > { %v478_v41 = vrot.slane %v470_v35, %v3588_v34  ;;  %v485_v42 = vrot.slane %v471_v36, %v3588_v34  ;;  %v523_v44 = vcombine.high %v3565_v14, %v3571_v16  ;;  %v494_v45 = vrot.slane %v486_v37, %v3588_v34 }
 0x1f6   : > { %v501_v46 = vrot.slane %v487_v38, %v3588_v34  ;;  %v514_v47 = vrot.slane %v506_v39, %v3577_v25  ;;  %v530_v48 = vrot.slane %v522_v40, %v3577_v25  ;;  %v719_v49 = vpop.permute.xlu0 %718  ;;  %v521_v53 = vrot.slane %v507_v43, %v3577_v25 }
 0x1f7   : > { %728 = vrot.lane.b32.xlu0 %v3569_v15, %s3249_s4  ;;  %732 = vrot.lane.b32.xlu1 %v3571_v16, %s3249_s4  ;;  %v574_v51 = vcombine.low %v478_v41, %v485_v42  ;;  %v2705_v52 = vcombine.high %v478_v41, %v485_v42  ;;  %v537_v54 = vrot.slane %v523_v44, %v3577_v25  ;;  %s3164_s4 = scalar_lea.vmem %s3163_s30, 512 }
 0x1f8   : > { %v590_v55 = vcombine.low %v494_v45, %v501_v46  ;;  %v2706_v56 = vcombine.high %v494_v45, %v501_v46  ;;  %v538_v57 = vcombine.low %v514_v47, %v530_v48  ;;  %v539_v58 = vcombine.high %v514_v47, %v530_v48  ;;  %p3166_p5 = scmp.lt.s32.totalorder %s3164_s4, %s3158_s15 }
 0x1f9   : > { %v554_v2 = vcombine.low %v521_v53, %v537_v54  ;;  %v555_v3 = vcombine.high %v521_v53, %v537_v54  ;;  %v3607_v4 = vrot.slane %v574_v51, %v3577_v25  ;;  %v3610_v5 = vrot.slane %v2705_v52, %v3577_v25 }
 0x1fa   : > { %v3617_v17 = vrot.slane %v538_v57, %v3588_v34  ;;  %v3620_v18 = vrot.slane %v539_v58, %v3588_v34  ;;  %v3623_v20 = vrot.slane %v590_v55, %v3577_v25  ;;  %v3626_v21 = vrot.slane %v2706_v56, %v3577_v25  ;;  %p3167_p3 = por %p3166_p5, %p3165_p4 }
 0x1fb   : > { %1022 = vrot.lane.b32.xlu1 %v412_v6, %s3250_s13  ;;  %v3629_v28 = vrot.slane %v554_v2, %v3588_v34  ;;  %v3632_v29 = vrot.slane %v555_v3, %v3588_v34  ;;  %v606_v37 = vcombine.low %v3607_v4, %v3610_v5  ;;  %v607_v38 = vcombine.high %v3607_v4, %v3610_v5 }
 0x1fc   : > { %v642_v35 = vcombine.low %v3617_v17, %v3620_v18  ;;  %v622_v39 = vcombine.low %v3623_v20, %v3626_v21  ;;  %p3168_p7 = pnand %p3167_p3, %p3161_p10 }
 0x25d   : > { %v723_v50 = vpop.permute.xlu1 %722 }
 0x261   : > { %v727_v59 = vpop.permute.xlu0 %726  ;;  %v731_v60 = vpop.permute.xlu1 %730 }
 0x262   : > { %v742_v61 = vcombine.low %v719_v49, %v727_v59  ;;  %v743_v62 = vcombine.high %v719_v49, %v727_v59  ;;  %v758_v63 = vcombine.low %v723_v50, %v731_v60  ;;  %v759_v1 = vcombine.high %v723_v50, %v731_v60 }
 0x264   : > { %v750_v6 = vrot.slane %v742_v61, %v3577_v25  ;;  %v757_v7 = vrot.slane %v743_v62, %v3577_v25  ;;  %v766_v8 = vrot.slane %v758_v63, %v3577_v25  ;;  %v773_v9 = vrot.slane %v759_v1, %v3577_v25 }
 0x265   : > { %v721_v19 = vpop.permute.xlu0 %720  ;;  %v725_v27 = vpop.permute.xlu1 %724 }
 0x266   : > { %v774_v22 = vcombine.low %v750_v6, %v766_v8  ;;  %v775_v23 = vcombine.high %v750_v6, %v766_v8  ;;  %v790_v24 = vcombine.low %v757_v7, %v773_v9  ;;  %v791_v26 = vcombine.high %v757_v7, %v773_v9 }
 0x268   : > { %v782_v30 = vrot.slane %v774_v22, %v3588_v34  ;;  %v789_v31 = vrot.slane %v775_v23, %v3588_v34  ;;  %v798_v32 = vrot.slane %v790_v24, %v3588_v34  ;;  %v805_v33 = vrot.slane %v791_v26, %v3588_v34 }
 0x269   : > { %v729_v36 = vpop.permute.xlu0 %728  ;;  %v733_v44 = vpop.permute.xlu1 %732  ;;  %v2707_v23 = vcombine.high %v3617_v17, %v3620_v18 }
 0x26a   : > { %v878_v40 = vcombine.low %v782_v30, %v789_v31  ;;  %v2709_v41 = vcombine.high %v782_v30, %v789_v31  ;;  %v894_v42 = vcombine.low %v798_v32, %v805_v33  ;;  %v2710_v43 = vcombine.high %v798_v32, %v805_v33 }
 0x26b   : > { %v810_v45 = vcombine.low %v721_v19, %v729_v36  ;;  %v811_v46 = vcombine.high %v721_v19, %v729_v36  ;;  %v826_v47 = vcombine.low %v725_v27, %v733_v44  ;;  %v827_v48 = vcombine.high %v725_v27, %v733_v44 }
 0x26c   : > { %v885_v49 = vrot.slane %v878_v40, %v3577_v25  ;;  %v893_v50 = vrot.slane %v2709_v41, %v3577_v25  ;;  %v901_v51 = vrot.slane %v894_v42, %v3577_v25  ;;  %v909_v52 = vrot.slane %v2710_v43, %v3577_v25 }
 0x26d   : > { %v818_v53 = vrot.slane %v810_v45, %v3577_v25  ;;  %v825_v54 = vrot.slane %v811_v46, %v3577_v25  ;;  %v834_v55 = vrot.slane %v826_v47, %v3577_v25  ;;  %v841_v56 = vrot.slane %v827_v48, %v3577_v25 }
 0x26e   : > { %v910_v57 = vcombine.low %v885_v49, %v893_v50  ;;  %v926_v58 = vcombine.low %v901_v51, %v909_v52  ;;  %v911_v59 = vcombine.high %v885_v49, %v893_v50  ;;  %v927_v60 = vcombine.high %v901_v51, %v909_v52 }
 0x26f   : > { %v842_v61 = vcombine.low %v818_v53, %v834_v55  ;;  %v843_v62 = vcombine.high %v818_v53, %v834_v55  ;;  %v858_v63 = vcombine.low %v825_v54, %v841_v56  ;;  %v859_v1 = vcombine.high %v825_v54, %v841_v56 }
 0x270   : > { %v918_v2 = vrot.slane %v910_v57, %v3588_v34  ;;  %v934_v3 = vrot.slane %v926_v58, %v3588_v34  ;;  %v925_v6 = vrot.slane %v911_v59, %v3588_v34  ;;  %v941_v7 = vrot.slane %v927_v60, %v3588_v34 }
 0x271   : > { %v850_v8 = vrot.slane %v842_v61, %v3588_v34  ;;  %v857_v9 = vrot.slane %v843_v62, %v3588_v34  ;;  %v866_v19 = vrot.slane %v858_v63, %v3588_v34  ;;  %v873_v22 = vrot.slane %v859_v1, %v3588_v34 }
 0x272   : > { %v942_v24 = vcombine.low %v918_v2, %v934_v3  ;;  %v943_v26 = vcombine.high %v918_v2, %v934_v3  ;;  %v614_v27 = vrot.slane %v606_v37, %v3588_v34  ;;  %v630_v41 = vrot.slane %v622_v39, %v3588_v34 }
 0x273   : > { %v946_v30 = vcombine.low %v850_v8, %v857_v9  ;;  %v2711_v31 = vcombine.high %v850_v8, %v857_v9  ;;  %v962_v32 = vcombine.low %v866_v19, %v873_v22  ;;  %v2712_v33 = vcombine.high %v866_v19, %v873_v22 }
 0x274   : > { %v1014_v36 = vpack.c.bf16 %v942_v24, %v942_v24  ;;  %v1015_v40 = vpack.c.bf16 %v943_v26, %v943_v26  ;;  %v944_v42 = vcombine.low %v925_v6, %v941_v7  ;;  %v658_v37 = vcombine.low %v3629_v28, %v3632_v29 }
 0x275   : > { %v953_v43 = vrot.slane %v946_v30, %v3577_v25  ;;  %v961_v44 = vrot.slane %v2711_v31, %v3577_v25  ;;  %v969_v45 = vrot.slane %v962_v32, %v3577_v25  ;;  %v977_v46 = vrot.slane %v2712_v33, %v3577_v25 }
 0x276   : > { %v1335_v47 = vsel %vm1330_vm2, %v1014_v36, 0  ;;  %v1381_v48 = vsel %vm1330_vm2, %v1015_v40, 0  ;;  %v945_v49 = vcombine.high %v925_v6, %v941_v7  ;;  %v2708_v39 = vcombine.high %v3629_v28, %v3632_v29 }
 0x277   : > { %2800 = vmatpush3.bf16.xpose.msra.mxu1 %v1335_v47  ;;  %2806 = vmatpush3.bf16.xpose.msra.mxu0 %v1381_v48  ;;  %v978_v50 = vcombine.low %v953_v43, %v961_v44  ;;  %v994_v51 = vcombine.low %v969_v45, %v977_v46  ;;  %v623_v52 = vcombine.high %v3623_v20, %v3626_v21 }
 0x278   : > { %v638_v53 = vcombine.low %v614_v27, %v630_v41  ;;  %v639_v54 = vcombine.high %v614_v27, %v630_v41  ;;  %2811 = vmatprep.subr.bf16.mxu1 %v3244_v0  ;;  %2817 = vmatprep.subr.bf16.mxu0 %v3244_v0  ;;  %v1016_v55 = vpack.c.bf16 %v944_v42, %v944_v42 }
 0x279   : > { %v1017_v56 = vpack.c.bf16 %v945_v49, %v945_v49  ;;  %v986_v57 = vrot.slane %v978_v50, %v3588_v34  ;;  %v1002_v58 = vrot.slane %v994_v51, %v3588_v34  ;;  %v649_v28 = vrot.slane %v642_v35, %v3577_v25  ;;  %v2750_v51 = vld [vmem:[%s3523_s29] sm:$0xff]  }
 0x27a   : > { %v657_v29 = vrot.slane %v2707_v23, %v3577_v25  ;;  %v665_v20 = vrot.slane %v658_v37, %v3577_v25  ;;  %v621_v21 = vrot.slane %v607_v38, %v3588_v34  ;;  %v673_v59 = vrot.slane %v2708_v39, %v3577_v25 }
 0x27b   : > { %v710_v60 = vpack.c.bf16 %v638_v53, %v638_v53  ;;  %v711_v61 = vpack.c.bf16 %v639_v54, %v639_v54  ;;  %v637_v62 = vrot.slane %v623_v52, %v3588_v34  ;;  %v1427_v63 = vsel %vm1330_vm2, %v1016_v55, 0 }
 0x27c   : > { %v979_v1 = vcombine.high %v953_v43, %v961_v44  ;;  %v1473_v17 = vsel %vm1330_vm2, %v1017_v56, 0  ;;  %v1010_v18 = vcombine.low %v986_v57, %v1002_v58  ;;  %v1011_v35 = vcombine.high %v986_v57, %v1002_v58 }
 0x27d   : > { %v995_v2 = vcombine.high %v969_v45, %v977_v46  ;;  %v674_v4 = vcombine.low %v649_v28, %v657_v29  ;;  %v640_v5 = vcombine.low %v621_v21, %v637_v62  ;;  %v641_v38 = vcombine.high %v621_v21, %v637_v62 }
 0x27e   : > { %2802 = vmatmul.mubr.msk.bf16.vlgmr.msra.gmra.mrb[0].mxu1 %vm1330_vm2, %v710_v60  ;;  %2808 = vmatmul.mubr.msk.bf16.vlgmr.msra.gmra.mrb[4].mxu0 %vm1330_vm2, %v711_v61  ;;  %v690_v3 = vcombine.low %v665_v20, %v673_v59  ;;  %v1018_v6 = vpack.c.bf16 %v1010_v18, %v1010_v18  ;;  %v1019_v7 = vpack.c.bf16 %v1011_v35, %v1011_v35  ;;  %v2751_v52 = vunpack.c.l.bf16 %v2750_v51 }
 0x27f   : > { %2812 = vmatpush3.bf16.xpose.msra.mxu1 %v1427_v63  ;;  %2818 = vmatpush3.bf16.xpose.msra.mxu0 %v1473_v17  ;;  %v993_v8 = vrot.slane %v979_v1, %v3588_v34  ;;  %v1009_v9 = vrot.slane %v995_v2, %v3588_v34  ;;  %v712_v19 = vpack.c.bf16 %v640_v5, %v640_v5 }
 0x280   : > { %2813 = vmatprep.mubr.msk.bf16.mxu1 %vm3245_vm0, %v3244_v0  ;;  %2819 = vmatprep.mubr.msk.bf16.mxu0 %vm3245_vm0, %v3244_v0  ;;  %v713_v22 = vpack.c.bf16 %v641_v38, %v641_v38  ;;  %v682_v23 = vrot.slane %v674_v4, %v3588_v34  ;;  %v698_v24 = vrot.slane %v690_v3, %v3588_v34  ;;  %v1519_v26 = vsel %vm1330_vm2, %v1018_v6, 0 }
 0x281   : > { %2823 = vmatprep.subr.bf16.mxu1 %v3244_v0  ;;  %2829 = vmatprep.subr.bf16.mxu0 %v3244_v0  ;;  %v1565_v27 = vsel %vm1330_vm2, %v1019_v7, 0  ;;  %v1012_v30 = vcombine.low %v993_v8, %v1009_v9  ;;  %v1013_v31 = vcombine.high %v993_v8, %v1009_v9  ;;  %v675_v32 = vcombine.high %v649_v28, %v657_v29 }
 0x282   : > { %v706_v33 = vcombine.low %v682_v23, %v698_v24  ;;  %v707_v36 = vcombine.high %v682_v23, %v698_v24  ;;  %v691_v40 = vcombine.high %v665_v20, %v673_v59  ;;  %v2752_v9 = vunpack.c.h.bf16 %v2750_v51 }
 0x283   : > { %v1020_v41 = vpack.c.bf16 %v1012_v30, %v1012_v30  ;;  %v1021_v42 = vpack.c.bf16 %v1013_v31, %v1013_v31  ;;  %v689_v45 = vrot.slane %v675_v32, %v3588_v34 }
 0x284   : > { %v714_v43 = vpack.c.bf16 %v706_v33, %v706_v33  ;;  %v715_v44 = vpack.c.bf16 %v707_v36, %v707_v36  ;;  %v705_v46 = vrot.slane %v691_v40, %v3588_v34 }
 0x285   : > { %v1611_v37 = vsel %vm1330_vm2, %v1020_v41, 0  ;;  %v1657_v47 = vsel %vm1330_vm2, %v1021_v42, 0 }
 0x286   : > { %2814 = vmatmul.mubr.msk.bf16.vlgmr.msra.gmra.mrb[4].mxu1 %vm1330_vm2, %v712_v19  ;;  %2820 = vmatmul.mubr.msk.bf16.vlgmr.msra.gmra.mrb[8].mxu0 %vm1330_vm2, %v713_v22  ;;  %v708_v48 = vcombine.low %v689_v45, %v705_v46  ;;  %v709_v49 = vcombine.high %v689_v45, %v705_v46 }
 0x287   : > { %2824 = vmatpush3.bf16.xpose.msra.mxu1 %v1519_v26  ;;  %2830 = vmatpush3.bf16.xpose.msra.mxu0 %v1565_v27 }
 0x288   : > { %2825 = vmatprep.mubr.msk.bf16.mxu1 %vm3245_vm0, %v3244_v0  ;;  %2831 = vmatprep.mubr.msk.bf16.mxu0 %vm3245_vm0, %v3244_v0  ;;  %v716_v39 = vpack.c.bf16 %v708_v48, %v708_v48  ;;  %v717_v50 = vpack.c.bf16 %v709_v49, %v709_v49 }
 0x289   : > { %2835 = vmatprep.subr.bf16.mxu1 %v3244_v0  ;;  %2841 = vmatprep.subr.bf16.mxu0 %v3244_v0 }
 0x28e   : > { %2826 = vmatmul.mubr.msk.bf16.vlgmr.msra.gmra.mrb[8].mxu1 %vm1330_vm2, %v714_v43  ;;  %2832 = vmatmul.mubr.msk.bf16.vlgmr.msra.gmra.mrb[12].mxu0 %vm1330_vm2, %v715_v44 }
 0x28f   : > { %2836 = vmatpush3.bf16.xpose.msra.mxu1 %v1611_v37  ;;  %2842 = vmatpush3.bf16.xpose.msra.mxu0 %v1657_v47 }
 0x290   : > { %2837 = vmatprep.mubr.msk.bf16.mxu1 %vm3245_vm0, %v3244_v0  ;;  %2843 = vmatprep.mubr.msk.bf16.mxu0 %vm3245_vm0, %v3244_v0 }
 0x291   : > { %2847 = vmatprep.subr.bf16.mxu1 %v3244_v0  ;;  %2853 = vmatprep.subr.bf16.mxu0 %v3244_v0 }
 0x296   : > { %2838 = vmatmul.mubr.msk.bf16.vlgmr.msra.gmra.mrb[12].mxu1 %vm1330_vm2, %v716_v39  ;;  %2844 = vmatmul.mubr.msk.bf16.vlgmr.msra.gmra.mrb[16].mxu0 %vm1330_vm2, %v717_v50 }
 0x297   : > { %2849 = vmatprep.mubr.msk.bf16.mxu1 %vm3245_vm0, %v3244_v0  ;;  %2855 = vmatprep.mubr.msk.bf16.mxu0 %vm3245_vm0, %v3244_v0 }
 0x351   : > { %v1371_v53 = vpop.f32.mrb[0].mxu1  ;;  %v1417_v54 = vpop.f32.mrb[4].mxu0 }
 0x352   : > { %v1699_v55 = vmul.f32 0.35355338, %v1371_v53  ;;  %v1700_v56 = vmul.f32 0.35355338, %v1417_v54  ;;  %v2803_v57 = vpop.f32.mrb[1].mxu1  ;;  %v2809_v58 = vpop.f32.mrb[5].mxu0 }
 0x353   : > { %v1374_v28 = vpop.f32.mrb[2].mxu1  ;;  %v1420_v29 = vpop.f32.mrb[6].mxu0 }
 0x354   : > { %v2804_v20 = vpop.f32.mrb[3].mxu1  ;;  %v2810_v21 = vpop.f32.mrb[7].mxu0  ;;  %v3737_v59 = vadd.f32 %v2751_v52, %v1699_v55  ;;  %v3739_v60 = vadd.f32 %v2751_v52, %v1700_v56 }
 0x355   : > { %v1023_v56 = vpop.permute.xlu1 %1022 }
 0x356   : > { %v1715_v61 = vsel %vm1330_vm2, %v3737_v59, -inf  ;;  %v1718_v62 = vsel %vm1330_vm2, %v3739_v60, -inf }
 0x357   : > { %1716 = vmax.xlane.f32.xlu0 %v1715_v61  ;;  %1719 = vmax.xlane.f32.xlu1 %v1718_v62 }
 0x359   : > { %v1463_v63 = vpop.f32.mrb[4].mxu1  ;;  %v1509_v1 = vpop.f32.mrb[8].mxu0 }
 0x35a   : > { %v1701_v17 = vmul.f32 0.35355338, %v1463_v63  ;;  %v1702_v18 = vmul.f32 0.35355338, %v1509_v1  ;;  %v2815_v35 = vpop.f32.mrb[5].mxu1  ;;  %v2821_v2 = vpop.f32.mrb[9].mxu0 }
 0x35b   : > { %v1466_v4 = vpop.f32.mrb[6].mxu1  ;;  %v1512_v5 = vpop.f32.mrb[10].mxu0 }
 0x35c   : > { %v2816_v38 = vpop.f32.mrb[7].mxu1  ;;  %v2822_v3 = vpop.f32.mrb[11].mxu0  ;;  %v1709_v6 = vadd.f32 %v2751_v52, %v1701_v17  ;;  %v1710_v7 = vadd.f32 %v2751_v52, %v1702_v18 }
 0x35e   : > { %v1721_v8 = vsel %vm1330_vm2, %v1709_v6, -inf  ;;  %v1724_v23 = vsel %vm1330_vm2, %v1710_v7, -inf }
 0x35f   : > { %1722 = vmax.xlane.f32.xlu0 %v1721_v8 }
 0x361   : > { %v1555_v19 = vpop.f32.mrb[8].mxu1  ;;  %v1601_v22 = vpop.f32.mrb[12].mxu0 }
 0x362   : > { %v1703_v24 = vmul.f32 0.35355338, %v1555_v19  ;;  %v1704_v26 = vmul.f32 0.35355338, %v1601_v22  ;;  %v2827_v27 = vpop.f32.mrb[9].mxu1  ;;  %v2833_v30 = vpop.f32.mrb[13].mxu0 }
 0x363   : > { %v1558_v31 = vpop.f32.mrb[10].mxu1  ;;  %1725 = vmax.xlane.f32.xlu0 %v1724_v23  ;;  %v1604_v32 = vpop.f32.mrb[14].mxu0 }
 0x364   : > { %v2828_v33 = vpop.f32.mrb[11].mxu1  ;;  %v2834_v36 = vpop.f32.mrb[15].mxu0  ;;  %v1711_v40 = vadd.f32 %v2752_v9, %v1703_v24  ;;  %v1712_v41 = vadd.f32 %v2752_v9, %v1704_v26 }
 0x366   : > { %v1727_v42 = vsel %vm1330_vm2, %v1711_v40, -inf  ;;  %v1730_v43 = vsel %vm1330_vm2, %v1712_v41, -inf }
 0x367   : > { %1728 = vmax.xlane.f32.xlu1 %v1727_v42  ;;  %1731 = vmax.xlane.f32.xlu0 %v1730_v43 }
 0x369   : > { %v1647_v44 = vpop.f32.mrb[12].mxu1  ;;  %v1693_v45 = vpop.f32.mrb[16].mxu0 }
 0x36a   : > { %v1705_v46 = vmul.f32 0.35355338, %v1647_v44  ;;  %v1706_v37 = vmul.f32 0.35355338, %v1693_v45  ;;  %v2839_v47 = vpop.f32.mrb[13].mxu1  ;;  %v2845_v48 = vpop.f32.mrb[17].mxu0 }
 0x36b   : > { %v1650_v49 = vpop.f32.mrb[14].mxu1  ;;  %v1696_v39 = vpop.f32.mrb[18].mxu0 }
 0x36c   : > { %v2840_v50 = vpop.f32.mrb[15].mxu1  ;;  %v2846_v51 = vpop.f32.mrb[19].mxu0  ;;  %v3749_v52 = vadd.f32 %v2752_v9, %v1705_v46  ;;  %v3751_v53 = vadd.f32 %v2752_v9, %v1706_v37 }
 0x36e   : > { %v1733_v54 = vsel %vm1330_vm2, %v3749_v52, -inf  ;;  %v1736_v55 = vsel %vm1330_vm2, %v3751_v53, -inf }
 0x36f   : > { %1734 = vmax.xlane.f32.xlu1 %v1733_v54  ;;  %1737 = vmax.xlane.f32.xlu0 %v1736_v55 }
 0x380   : > { %1030 = vrot.lane.b32.xlu1 %v3561_v13, %s3250_s13 }
 0x384   : > { %1034 = vrot.lane.b32.xlu1 %v3558_v12, %s3250_s13 }
 0x385   : > { %1026 = vrot.lane.b32.xlu0 %v3556_v11, %s3250_s13 }
 0x388   : > { %1024 = vrot.lane.b32.xlu1 %v3551_v10, %s3250_s13 }
 0x3e4   : > { %v1717_v57 = vpop.xlane.xlu0 %1716  ;;  %v1720_v58 = vpop.xlane.xlu1 %1719 }
 0x3e5   : > { %v1739_v28 = vsub.f32 %v3737_v59, %v1717_v57  ;;  %v1740_v29 = vsub.f32 %v3739_v60, %v1720_v58 }
 0x3e7   : > { %v1747_v20 = vmul.f32 1.442695, %v1739_v28  ;;  %v1749_v21 = vmul.f32 1.442695, %v1740_v29 }
 0x3e9   : > { %3010 = vpow2.f32 %v1747_v20 }
 0x3ea   : > { %3012 = vpow2.f32 %v1749_v21 }
 0x3ec   : > { %v1723_v13 = vpop.xlane.xlu0 %1722 }
 0x3ed   : > { %v1741_v61 = vsub.f32 %v1709_v6, %v1723_v13 }
 0x3ef   : > { %v1751_v12 = vmul.f32 1.442695, %v1741_v61 }
 0x3f0   : > { %v1726_v62 = vpop.xlane.xlu0 %1725 }
 0x3f1   : > { %3014 = vpow2.f32 %v1751_v12  ;;  %v1742_v11 = vsub.f32 %v1710_v7, %v1726_v62 }
 0x3f3   : > { %v3767_v63 = vpop.eup %3010  ;;  %v1753_v10 = vmul.f32 1.442695, %v1742_v11 }
 0x3f4   : > { %v3769_v1 = vpop.eup %3012  ;;  %v1729_v17 = vpop.xlane.xlu1 %1728  ;;  %v1763_v59 = vsel %vm1330_vm2, %v3767_v63, 0.0 }
 0x3f5   : > { %v1732_v18 = vpop.xlane.xlu0 %1731  ;;  %3016 = vpow2.f32 %v1753_v10  ;;  %v1743_v60 = vsub.f32 %v1711_v40, %v1729_v17  ;;  %1764 = vadd.xlane.f32.xlu1 %v1763_v59  ;;  %v1766_v2 = vsel %vm1330_vm2, %v3769_v1, 0.0 }
 0x3f6   : > { %v1744_v35 = vsub.f32 %v1712_v41, %v1732_v18  ;;  %1767 = vadd.xlane.f32.xlu0 %v1766_v2 }
 0x3f7   : > { %v1755_v4 = vmul.f32 1.442695, %v1743_v60 }
 0x3f8   : > { %v1757_v5 = vmul.f32 1.442695, %v1744_v35 }
 0x3f9   : > { %3018 = vpow2.f32 %v1755_v4 }
 0x3fa   : > { %3020 = vpow2.f32 %v1757_v5 }
 0x3fb   : > { %v3775_v38 = vpop.eup %3014 }
 0x3fc   : > { %v3777_v3 = vpop.xlane.xlu1 %1734  ;;  %v1769_v6 = vsel %vm1330_vm2, %v3775_v38, 0.0  ;;  %v3781_v7 = vpop.xlane.xlu0 %1737 }
 0x3fd   : > { %1770 = vadd.xlane.f32.xlu0 %v1769_v6  ;;  %v1746_v4 = vsub.f32 %v3751_v53, %v3781_v7 }
 0x3ff   : > { %v3783_v8 = vpop.eup %3016  ;;  %v1761_v5 = vmul.f32 1.442695, %v1746_v4 }
 0x400   : > { %v1031_v9 = vpop.permute.xlu1 %1030  ;;  %v1772_v19 = vsel %vm1330_vm2, %v3783_v8, 0.0  ;;  %v1027_v26 = vpop.permute.xlu0 %1026 }
 0x401   : > { %1773 = vadd.xlane.f32.xlu1 %v1772_v19  ;;  %v1046_v23 = vcombine.low %v1023_v56, %v1031_v9  ;;  %v1047_v24 = vcombine.high %v1023_v56, %v1031_v9  ;;  %3022 = vpow2.f32 %v1761_v5 }
 0x403   : > { %v3787_v22 = vpop.eup %3018  ;;  %v1054_v36 = vrot.slane %v1046_v23, %v3577_v25  ;;  %v1061_v40 = vrot.slane %v1047_v24, %v3577_v25 }
 0x404   : > { %v1035_v27 = vpop.permute.xlu1 %1034  ;;  %v1775_v30 = vsel %vm1330_vm2, %v3787_v22, 0.0  ;;  %v3791_v31 = vpop.eup %3020 }
 0x405   : > { %v1062_v32 = vcombine.low %v1027_v26, %v1035_v27  ;;  %v1063_v33 = vcombine.high %v1027_v26, %v1035_v27  ;;  %1776 = vadd.xlane.f32.xlu0 %v1775_v30  ;;  %v1778_v43 = vsel %vm1330_vm2, %v3791_v31, 0.0 }
 0x407   : > { %v1070_v41 = vrot.slane %v1062_v32, %v3577_v25  ;;  %v1077_v42 = vrot.slane %v1063_v33, %v3577_v25 }
 0x408   : > { %v1025_v53 = vpop.permute.xlu1 %1024 }
 0x409   : > { %v1078_v44 = vcombine.low %v1054_v36, %v1070_v41  ;;  %v1079_v45 = vcombine.high %v1054_v36, %v1070_v41  ;;  %v1094_v46 = vcombine.low %v1061_v40, %v1077_v42  ;;  %v1095_v37 = vcombine.high %v1061_v40, %v1077_v42  ;;  %1779 = vadd.xlane.f32.xlu0 %v1778_v43 }
 0x40b   : > { %v1086_v47 = vrot.slane %v1078_v44, %v3588_v34  ;;  %v1093_v48 = vrot.slane %v1079_v45, %v3588_v34  ;;  %v1102_v49 = vrot.slane %v1094_v46, %v3588_v34  ;;  %v1109_v39 = vrot.slane %v1095_v37, %v3588_v34  ;;  %v3825_v9 = vpop.eup %3022 }
 0x40c   : > { %v1784_v19 = vsel %vm1330_vm2, %v3825_v9, 0.0 }
 0x40d   : > { %v1182_v50 = vcombine.low %v1086_v47, %v1093_v48  ;;  %v2713_v51 = vcombine.high %v1086_v47, %v1093_v48  ;;  %v1198_v54 = vcombine.low %v1102_v49, %v1109_v39  ;;  %v2714_v55 = vcombine.high %v1102_v49, %v1109_v39 }
 0x40f   : > { %v1189_v56 = vrot.slane %v1182_v50, %v3577_v25  ;;  %v1197_v57 = vrot.slane %v2713_v51, %v3577_v25  ;;  %v1205_v58 = vrot.slane %v1198_v54, %v3577_v25  ;;  %v1213_v28 = vrot.slane %v2714_v55, %v3577_v25 }
 0x411   : > { %v1214_v29 = vcombine.low %v1189_v56, %v1197_v57  ;;  %v1230_v20 = vcombine.low %v1205_v58, %v1213_v28  ;;  %v1215_v21 = vcombine.high %v1189_v56, %v1197_v57  ;;  %v1231_v13 = vcombine.high %v1205_v58, %v1213_v28 }
 0x412   : > { %1032 = vrot.lane.b32.xlu1 %v3569_v15, %s3250_s13 }
 0x413   : > { %v1222_v61 = vrot.slane %v1214_v29, %v3588_v34  ;;  %v1238_v12 = vrot.slane %v1230_v20, %v3588_v34  ;;  %v1229_v62 = vrot.slane %v1215_v21, %v3588_v34  ;;  %v1245_v11 = vrot.slane %v1231_v13, %v3588_v34 }
 0x415   : > { %v1246_v10 = vcombine.low %v1222_v61, %v1238_v12  ;;  %v1247_v17 = vcombine.high %v1222_v61, %v1238_v12  ;;  %v1248_v18 = vcombine.low %v1229_v62, %v1245_v11  ;;  %v1249_v59 = vcombine.high %v1229_v62, %v1245_v11 }
 0x416   : > { %1036 = vrot.lane.b32.xlu1 %v3571_v16, %s3250_s13  ;;  %v1745_v16 = vsub.f32 %v3749_v52, %v3777_v3 }
 0x417   : > { %v1318_v60 = vpack.c.bf16 %v1246_v10, %v1246_v10  ;;  %v1319_v35 = vpack.c.bf16 %v1247_v17, %v1247_v17  ;;  %v1320_v32 = vpack.c.bf16 %v1248_v18, %v1248_v18  ;;  %v1321_v36 = vpack.c.bf16 %v1249_v59, %v1249_v59 }
 0x418   : > { %v1759_v6 = vmul.f32 1.442695, %v1745_v16 }
 0x419   : > { %v1816_v15 = vsel %vm1814_vm3, %v1318_v60, 0  ;;  %v1862_v2 = vsel %vm1814_vm3, %v1319_v35, 0  ;;  %v1908_v42 = vsel %vm1814_vm3, %v1320_v32, 0  ;;  %v1954_v44 = vsel %vm1814_vm3, %v1321_v36, 0 }
 0x41a   : > { %2848 = vmatpush3.bf16.msra.mxu1 %v1816_v15  ;;  %2854 = vmatpush3.bf16.msra.mxu0 %v1862_v2  ;;  %3024 = vpow2.f32 %v1759_v6 }
 0x41b   : > { %2859 = vmatprep.subr.bf16.mxu1 %v3244_v0  ;;  %2865 = vmatprep.subr.bf16.mxu0 %v3244_v0 }
 0x41f   : > { %1028 = vrot.lane.b32.xlu0 %v3565_v14, %s3250_s13 }
 0x424   : > { %v3829_v23 = vpop.eup %3024 }
 0x425   : > { %v1781_v14 = vsel %vm1330_vm2, %v3829_v23, 0.0 }
 0x43a   : > { %1785 = vadd.xlane.f32.xlu1 %v1784_v19 }
 0x43e   : > { %1782 = vadd.xlane.f32.xlu0 %v1781_v14 }
 0x482   : > { %v1765_v7 = vpop.xlane.xlu1 %1764 }
 0x483   : > { %3026 = vrcp.f32 %v1765_v7  ;;  %v1768_v52 = vpop.xlane.xlu0 %1767 }
 0x484   : > { %3028 = vrcp.f32 %v1768_v52 }
 0x48a   : > { %v1771_v3 = vpop.xlane.xlu0 %1770 }
 0x48b   : > { %3030 = vrcp.f32 %v1771_v3 }
 0x48d   : > { %v3027_v24 = vpop.eup %3026 }
 0x48e   : > { %v3029_v26 = vpop.eup %3028  ;;  %v1795_v27 = vmul.f32 %v3027_v24, %v3767_v63  ;;  %v1774_v30 = vpop.xlane.xlu1 %1773 }
 0x48f   : > { %v1796_v33 = vmul.f32 %v3029_v26, %v3769_v1  ;;  %3032 = vrcp.f32 %v1774_v30 }
 0x490   : > { %v1803_v40 = vpack.c.bf16 %v1795_v27, %v1795_v27 }
 0x491   : > { %v1804_v41 = vpack.c.bf16 %v1796_v33, %v1796_v33 }
 0x492   : > { %2850 = vmatmul.mubr.msk.bf16.vlgmr.msra.gmra.mrb[16].mxu1 %vm1330_vm2, %v1803_v40  ;;  %v1777_v43 = vpop.xlane.xlu0 %1776  ;;  %v1033_v45 = vpop.permute.xlu1 %1032 }
 0x493   : > { %2856 = vmatmul.mubr.msk.bf16.vlgmr.msra.gmra.mrb[20].mxu0 %vm1330_vm2, %v1804_v41  ;;  %2860 = vmatpush3.bf16.msra.mxu1 %v1908_v42  ;;  %v1114_v48 = vcombine.low %v1025_v53, %v1033_v45  ;;  %v1115_v49 = vcombine.high %v1025_v53, %v1033_v45  ;;  %3034 = vrcp.f32 %v1777_v43 }
 0x494   : > { %2866 = vmatpush3.bf16.msra.mxu0 %v1954_v44  ;;  %2861 = vmatprep.mubr.msk.bf16.mxu1 %vm3245_vm0, %v3244_v0 }
 0x495   : > { %v3031_v63 = vpop.eup %3030  ;;  %2867 = vmatprep.mubr.msk.bf16.mxu0 %vm3245_vm0, %v3244_v0  ;;  %2871 = vmatprep.subr.bf16.mxu1 %v3244_v0  ;;  %v1129_v57 = vrot.slane %v1115_v49, %v3577_v25 }
 0x496   : > { %v1797_v1 = vmul.f32 %v3031_v63, %v3775_v38  ;;  %v1780_v46 = vpop.xlane.xlu0 %1779  ;;  %2877 = vmatprep.subr.bf16.mxu0 %v3244_v0  ;;  %v1037_v50 = vpop.permute.xlu1 %1036  ;;  %v1122_v38 = vrot.slane %v1114_v48, %v3577_v25 }
 0x497   : > { %3036 = vrcp.f32 %v1780_v46 }
 0x498   : > { %v1805_v37 = vpack.c.bf16 %v1797_v1, %v1797_v1 }
 0x499   : > { %v3033_v47 = vpop.eup %3032 }
 0x49a   : > { %v1798_v39 = vmul.f32 %v3033_v47, %v3783_v8  ;;  %2862 = vmatmul.mubr.msk.bf16.vlgmr.msra.gmra.mrb[20].mxu1 %vm1330_vm2, %v1805_v37  ;;  %v1029_v51 = vpop.permute.xlu0 %1028 }
 0x49b   : > { %v1130_v54 = vcombine.low %v1029_v51, %v1037_v50  ;;  %v1131_v55 = vcombine.high %v1029_v51, %v1037_v50  ;;  %2873 = vmatprep.mubr.msk.bf16.mxu1 %vm3245_vm0, %v3244_v0 }
 0x49c   : > { %v1806_v56 = vpack.c.bf16 %v1798_v39, %v1798_v39 }
 0x49d   : > { %v1138_v58 = vrot.slane %v1130_v54, %v3577_v25  ;;  %v1145_v28 = vrot.slane %v1131_v55, %v3577_v25  ;;  %v3035_v6 = vpop.eup %3034 }
 0x49e   : > { %2868 = vmatmul.mubr.msk.bf16.vlgmr.msra.gmra.mrb[24].mxu0 %vm1330_vm2, %v1806_v56  ;;  %v1799_v30 = vmul.f32 %v3035_v6, %v3787_v22 }
 0x49f   : > { %v1146_v8 = vcombine.low %v1122_v38, %v1138_v58  ;;  %v1147_v29 = vcombine.high %v1122_v38, %v1138_v58  ;;  %v1162_v20 = vcombine.low %v1129_v57, %v1145_v28  ;;  %v1163_v21 = vcombine.high %v1129_v57, %v1145_v28  ;;  %2879 = vmatprep.mubr.msk.bf16.mxu0 %vm3245_vm0, %v3244_v0 }
 0x4a0   : > { %v1807_v44 = vpack.c.bf16 %v1799_v30, %v1799_v30 }
 0x4a1   : > { %v1154_v13 = vrot.slane %v1146_v8, %v3588_v34  ;;  %v1161_v61 = vrot.slane %v1147_v29, %v3588_v34  ;;  %v1170_v12 = vrot.slane %v1162_v20, %v3588_v34  ;;  %v1177_v62 = vrot.slane %v1163_v21, %v3588_v34  ;;  %v3037_v52 = vpop.eup %3036 }
 0x4a2   : > { %v1800_v32 = vmul.f32 %v3037_v52, %v3791_v31 }
 0x4a3   : > { %v1250_v11 = vcombine.low %v1154_v13, %v1161_v61  ;;  %v2715_v10 = vcombine.high %v1154_v13, %v1161_v61  ;;  %v1266_v17 = vcombine.low %v1170_v12, %v1177_v62  ;;  %v2716_v18 = vcombine.high %v1170_v12, %v1177_v62 }
 0x4a4   : > { %v1808_v45 = vpack.c.bf16 %v1800_v32, %v1800_v32 }
 0x4a5   : > { %v1257_v59 = vrot.slane %v1250_v11, %v3577_v25  ;;  %v1265_v60 = vrot.slane %v2715_v10, %v3577_v25  ;;  %v1273_v35 = vrot.slane %v1266_v17, %v3577_v25  ;;  %v1281_v15 = vrot.slane %v2716_v18, %v3577_v25 }
 0x4a7   : > { %v1282_v2 = vcombine.low %v1257_v59, %v1265_v60  ;;  %v1298_v4 = vcombine.low %v1273_v35, %v1281_v15  ;;  %v1283_v16 = vcombine.high %v1257_v59, %v1265_v60  ;;  %v1299_v5 = vcombine.high %v1273_v35, %v1281_v15 }
 0x4a9   : > { %v1290_v19 = vrot.slane %v1282_v2, %v3588_v34  ;;  %v1306_v14 = vrot.slane %v1298_v4, %v3588_v34  ;;  %v1297_v53 = vrot.slane %v1283_v16, %v3588_v34  ;;  %v1313_v7 = vrot.slane %v1299_v5, %v3588_v34 }
 0x4ab   : > { %v1314_v3 = vcombine.low %v1290_v19, %v1306_v14  ;;  %v1315_v24 = vcombine.high %v1290_v19, %v1306_v14  ;;  %v1316_v26 = vcombine.low %v1297_v53, %v1313_v7  ;;  %v1317_v27 = vcombine.high %v1297_v53, %v1313_v7 }
 0x4ad   : > { %v1322_v33 = vpack.c.bf16 %v1314_v3, %v1314_v3  ;;  %v1323_v36 = vpack.c.bf16 %v1315_v24, %v1315_v24  ;;  %v1324_v42 = vpack.c.bf16 %v1316_v26, %v1316_v26  ;;  %v1325_v43 = vpack.c.bf16 %v1317_v27, %v1317_v27 }
 0x4af   : > { %v2000_v40 = vsel %vm1814_vm3, %v1322_v33, 0  ;;  %v2046_v41 = vsel %vm1814_vm3, %v1323_v36, 0  ;;  %v2092_v22 = vsel %vm1814_vm3, %v1324_v42, 0  ;;  %v2138_v31 = vsel %vm1814_vm3, %v1325_v43, 0 }
 0x4b0   : > { %2872 = vmatpush3.bf16.msra.mxu1 %v2000_v40  ;;  %2878 = vmatpush3.bf16.msra.mxu0 %v2046_v41 }
 0x4b1   : > { %2883 = vmatprep.subr.bf16.mxu1 %v3244_v0  ;;  %2889 = vmatprep.subr.bf16.mxu0 %v3244_v0 }
 0x4b3   : > { %2874 = vmatmul.mubr.msk.bf16.vlgmr.msra.gmra.mrb[24].mxu1 %vm1330_vm2, %v1807_v44  ;;  %2880 = vmatmul.mubr.msk.bf16.vlgmr.msra.gmra.mrb[28].mxu0 %vm1330_vm2, %v1808_v45 }
 0x4b4   : > { %2884 = vmatpush3.bf16.msra.mxu1 %v2092_v22  ;;  %2890 = vmatpush3.bf16.msra.mxu0 %v2138_v31 }
 0x4b5   : > { %2891 = vmatprep.mubr.msk.bf16.mxu0 %vm3245_vm0, %v3244_v0  ;;  %2885 = vmatprep.mubr.msk.bf16.mxu1 %vm3245_vm0, %v3244_v0 }
 0x4b6   : > { %2895 = vmatprep.subr.bf16.mxu1 %v3244_v0 }
 0x4c7   : > { %v1786_v63 = vpop.xlane.xlu1 %1785 }
 0x4c8   : > { %3038 = vrcp.f32 %v1786_v63 }
 0x4cb   : > { %v1783_v1 = vpop.xlane.xlu0 %1782 }
 0x4cc   : > { %3040 = vrcp.f32 %v1783_v1 }
 0x4d2   : > { %v3039_v46 = vpop.eup %3038 }
 0x4d3   : > { %v1802_v37 = vmul.f32 %v3039_v46, %v3825_v9 }
 0x4d5   : > { %v1810_v47 = vpack.c.bf16 %v1802_v37, %v1802_v37 }
 0x4d6   : > { %v3041_v48 = vpop.eup %3040 }
 0x4d7   : > { %v1801_v49 = vmul.f32 %v3041_v48, %v3829_v23  ;;  %2892 = vmatmul.mubr.msk.bf16.vlgmr.msra.gmra.mrb[32].mxu0 %vm1330_vm2, %v1810_v47 }
 0x4d9   : > { %v1809_v39 = vpack.c.bf16 %v1801_v49, %v1801_v49 }
 0x4db   : > { %2886 = vmatmul.mubr.msk.bf16.vlgmr.msra.gmra.mrb[28].mxu1 %vm1330_vm2, %v1809_v39 }
 0x4dc   : > { %2899 = vmatprep.mubr.msk.bf16.mxu1 %vm3245_vm0, %v3244_v0 }
 0x565   : > { %v1852_v50 = vpop.f32.mrb[16].mxu1 }
 0x566   : > { %v1898_v51 = vpop.f32.mrb[20].mxu0  ;;  %v2851_v54 = vpop.f32.mrb[17].mxu1 }
 0x567   : > { %v2857_v55 = vpop.f32.mrb[21].mxu0  ;;  %v1855_v56 = vpop.f32.mrb[18].mxu1 }
 0x568   : > { %v1901_v38 = vpop.f32.mrb[22].mxu0  ;;  %v2852_v57 = vpop.f32.mrb[19].mxu1 }
 0x569   : > { %v2858_v9 = vpop.f32.mrb[23].mxu0 }
 0x56d   : > { %v1944_v58 = vpop.f32.mrb[20].mxu1 }
 0x56e   : > { %v2180_v28 = vcombine.low %v1852_v50, %v1944_v58  ;;  %v2181_v8 = vcombine.high %v1852_v50, %v1944_v58  ;;  %v2863_v23 = vpop.f32.mrb[21].mxu1 }
 0x56f   : > { %v1947_v29 = vpop.f32.mrb[22].mxu1 }
 0x570   : > { %v2864_v20 = vpop.f32.mrb[23].mxu1  ;;  %v2188_v11 = vrot.slane %v2180_v28, %v3577_v25  ;;  %v2195_v10 = vrot.slane %v2181_v8, %v3577_v25 }
 0x571   : > { %v1990_v21 = vpop.f32.mrb[24].mxu0 }
 0x572   : > { %v2196_v13 = vcombine.low %v1898_v51, %v1990_v21  ;;  %v2197_v61 = vcombine.high %v1898_v51, %v1990_v21  ;;  %v2869_v12 = vpop.f32.mrb[25].mxu0 }
 0x573   : > { %v1993_v62 = vpop.f32.mrb[26].mxu0 }
 0x574   : > { %v2204_v17 = vrot.slane %v2196_v13, %v3577_v25  ;;  %v2211_v18 = vrot.slane %v2197_v61, %v3577_v25  ;;  %v2870_v59 = vpop.f32.mrb[27].mxu0 }
 0x576   : > { %v2212_v60 = vcombine.low %v2188_v11, %v2204_v17  ;;  %v2213_v35 = vcombine.high %v2188_v11, %v2204_v17  ;;  %v2228_v15 = vcombine.low %v2195_v10, %v2211_v18  ;;  %v2229_v2 = vcombine.high %v2195_v10, %v2211_v18 }
 0x578   : > { %v2220_v4 = vrot.slane %v2212_v60, %v3588_v34  ;;  %v2227_v16 = vrot.slane %v2213_v35, %v3588_v34  ;;  %v2236_v5 = vrot.slane %v2228_v15, %v3588_v34  ;;  %v2243_v6 = vrot.slane %v2229_v2, %v3588_v34  ;;  %v3008_v2 = vld [vmem:[#allocation8] sm:$0xff]  }
 0x579   : > { %2896 = vmatpush3.bf16.msra.mxu1 %v3008_v2 }
 0x57a   : > { %v2316_v19 = vcombine.low %v2220_v4, %v2227_v16  ;;  %v2733_v14 = vcombine.high %v2220_v4, %v2227_v16  ;;  %v2332_v53 = vcombine.low %v2236_v5, %v2243_v6  ;;  %v2734_v7 = vcombine.high %v2236_v5, %v2243_v6  ;;  %2897 = vmatprep.subr.bf16.mxu1 %v3244_v0 }
 0x57c   : > { %v2323_v52 = vrot.slane %v2316_v19, %v3577_v25  ;;  %v2331_v3 = vrot.slane %v2733_v14, %v3577_v25  ;;  %v2339_v24 = vrot.slane %v2332_v53, %v3577_v25  ;;  %v2347_v26 = vrot.slane %v2734_v7, %v3577_v25 }
 0x57e   : > { %v2349_v27 = vcombine.high %v2323_v52, %v2331_v3  ;;  %v2365_v30 = vcombine.high %v2339_v24, %v2347_v26  ;;  %v2348_v32 = vcombine.low %v2323_v52, %v2331_v3  ;;  %v2364_v33 = vcombine.low %v2339_v24, %v2347_v26  ;;  %v3009_v52 = vld [vmem:[#allocation8 + $0x8] sm:$0xff]  }
 0x57f   : > { %2898 = vmatpush3.bf16.msra.mxu1 %v3009_v52 }
 0x580   : > { %v3903_v36 = vrot.slane %v2349_v27, %v3588_v34  ;;  %v3906_v40 = vrot.slane %v2365_v30, %v3588_v34  ;;  %v3909_v41 = vrot.slane %v2348_v32, %v3588_v34  ;;  %v3912_v42 = vrot.slane %v2364_v33, %v3588_v34 }
 0x582   : > { %v2382_v43 = vcombine.low %v3903_v36, %v3906_v40  ;;  %v2380_v44 = vcombine.low %v3909_v41, %v3912_v42  ;;  %v2381_v45 = vcombine.high %v3909_v41, %v3912_v42  ;;  %v2383_v22 = vcombine.high %v3903_v36, %v3906_v40  ;;  %v2737_v41 = vld [vmem:[%s4008_s5] ss:$0 sm:$0xff] }
 0x586   : > { %v2036_v31 = vpop.f32.mrb[24].mxu1  ;;  %v2082_v63 = vpop.f32.mrb[28].mxu0 }
 0x587   : > { %v2875_v1 = vpop.f32.mrb[25].mxu1  ;;  %v2881_v46 = vpop.f32.mrb[29].mxu0 }
 0x588   : > { %v2039_v37 = vpop.f32.mrb[26].mxu1  ;;  %v2085_v47 = vpop.f32.mrb[30].mxu0 }
 0x589   : > { %v2876_v48 = vpop.f32.mrb[27].mxu1  ;;  %v2882_v49 = vpop.f32.mrb[31].mxu0 }
 0x5aa   : > { %v2174_v39 = vpop.f32.mrb[32].mxu0 }
 0x5ab   : > { %v2264_v50 = vcombine.low %v2082_v63, %v2174_v39  ;;  %v2265_v51 = vcombine.high %v2082_v63, %v2174_v39  ;;  %v2893_v54 = vpop.f32.mrb[33].mxu0 }
 0x5ac   : > { %v2177_v55 = vpop.f32.mrb[34].mxu0 }
 0x5ad   : > { %v2894_v56 = vpop.f32.mrb[35].mxu0  ;;  %v2272_v8 = vrot.slane %v2264_v50, %v3577_v25  ;;  %v2279_v23 = vrot.slane %v2265_v51, %v3577_v25 }
 0x5ae   : > { %v2128_v38 = vpop.f32.mrb[28].mxu1 }
 0x5af   : > { %v2248_v57 = vcombine.low %v2036_v31, %v2128_v38  ;;  %v2249_v9 = vcombine.high %v2036_v31, %v2128_v38  ;;  %v2887_v58 = vpop.f32.mrb[29].mxu1 }
 0x5b0   : > { %v2131_v28 = vpop.f32.mrb[30].mxu1 }
 0x5b1   : > { %v2256_v29 = vrot.slane %v2248_v57, %v3577_v25  ;;  %v2263_v20 = vrot.slane %v2249_v9, %v3577_v25  ;;  %v2888_v21 = vpop.f32.mrb[31].mxu1 }
 0x5b3   : > { %v2280_v13 = vcombine.low %v2256_v29, %v2272_v8  ;;  %v2281_v61 = vcombine.high %v2256_v29, %v2272_v8  ;;  %v2296_v12 = vcombine.low %v2263_v20, %v2279_v23  ;;  %v2297_v62 = vcombine.high %v2263_v20, %v2279_v23 }
 0x5b5   : > { %v2288_v11 = vrot.slane %v2280_v13, %v3588_v34  ;;  %v2295_v10 = vrot.slane %v2281_v61, %v3588_v34  ;;  %v2304_v17 = vrot.slane %v2296_v12, %v3588_v34  ;;  %v2311_v18 = vrot.slane %v2297_v62, %v3588_v34 }
 0x5b7   : > { %v2384_v59 = vcombine.low %v2288_v11, %v2295_v10  ;;  %v2735_v60 = vcombine.high %v2288_v11, %v2295_v10  ;;  %v2400_v35 = vcombine.low %v2304_v17, %v2311_v18  ;;  %v2736_v15 = vcombine.high %v2304_v17, %v2311_v18 }
 0x5b9   : > { %v2391_v4 = vrot.slane %v2384_v59, %v3577_v25  ;;  %v2399_v16 = vrot.slane %v2735_v60, %v3577_v25  ;;  %v2407_v5 = vrot.slane %v2400_v35, %v3577_v25  ;;  %v2415_v6 = vrot.slane %v2736_v15, %v3577_v25 }
 0x5bb   : > { %v2417_v19 = vcombine.high %v2391_v4, %v2399_v16  ;;  %v2433_v14 = vcombine.high %v2407_v5, %v2415_v6  ;;  %v2416_v53 = vcombine.low %v2391_v4, %v2399_v16  ;;  %v2432_v7 = vcombine.low %v2407_v5, %v2415_v6 }
 0x5bd   : > { %v2431_v3 = vrot.slane %v2417_v19, %v3588_v34  ;;  %v2447_v24 = vrot.slane %v2433_v14, %v3588_v34  ;;  %v2424_v26 = vrot.slane %v2416_v53, %v3588_v34  ;;  %v2440_v27 = vrot.slane %v2432_v7, %v3588_v34 }
 0x5bf   : > { %v2450_v30 = vcombine.low %v2431_v3, %v2447_v24  ;;  %v2449_v32 = vcombine.high %v2424_v26, %v2440_v27  ;;  %v2448_v25 = vcombine.low %v2424_v26, %v2440_v27  ;;  %v2451_v33 = vcombine.high %v2431_v3, %v2447_v24 }
 0x5c1   : > { %v2995_v36 = vpack.i.bf16 %v2450_v30, %v2382_v43  ;;  %v2990_v40 = vpack.i.bf16 %v2449_v32, %v2381_v45  ;;  %v3000_v31 = vpack.i.bf16 %v2451_v33, %v2383_v22 }
 0x5c3   : > { %2996 = vrot.lane.b32.xlu1 %v2995_v36, %s3253_s20  ;;  %2991 = vrot.lane.b32.xlu0 %v2990_v40, %s3254_s16 }
 0x5c7   : > { %3001 = vrot.lane.b32.xlu0 %v3000_v31, %s3255_s17 }
 0x635   : > { %v2997_v0 = vpop.permute.xlu1 %2996  ;;  %v2992_v63 = vpop.permute.xlu0 %2991 }
 0x636   : > { %v2994_v1 = vunpack.i.h.bf16 %v2992_v63  ;;  %v2993_v46 = vunpack.i.l.bf16 %v2992_v63  ;;  %v2999_v34 = vunpack.i.h.bf16 %v2997_v0  ;;  %v2998_v37 = vunpack.i.l.bf16 %v2997_v0 }
 0x638   : > { %v2476_v43 = vsel %vm1330_vm2, %v2380_v44, %v2993_v46  ;;  %v2477_v45 = vsel %vm1330_vm2, %v2448_v25, %v2994_v1 }
 0x639   : > { %v3002_v22 = vpop.permute.xlu0 %3001  ;;  %v2479_v49 = vsel %vm2478_vm4, %v2476_v43, %v2998_v37  ;;  %v2480_v39 = vsel %vm2478_vm4, %v2477_v45, %v2999_v34 }
 0x63a   : > { %v3004_v47 = vunpack.i.h.bf16 %v3002_v22  ;;  %v3003_v48 = vunpack.i.l.bf16 %v3002_v22 }
 0x63c   : > { %v2482_v50 = vsel %vm2481_vm5, %v2479_v49, %v3003_v48  ;;  %v2483_v51 = vsel %vm2481_vm5, %v2480_v39, %v3004_v47 }
 0x63d   : > { %v2484_v54 = vpack.c.bf16 %v2483_v51, %v2482_v50 }
 0x63f   : > { %2900 = vmatmul.mubr.msk.bf16.vlgmr.msra.gmra.mrb[32].mxu1 %vm373_vm1, %v2484_v54 }
 0x712   : > { %v2545_v42 = vpop.f32.mrb[32].mxu1 }
 0x713   : > { %v2546_v44 = vadd.f32 %v2737_v41, %v2545_v42  ;;  %v2901_v55 = vpop.f32.mrb[33].mxu1 }
 0x714   : > { %v2548_v56 = vpop.f32.mrb[34].mxu1 }
 0x715   : > { %2552 = vst.msk [vmem:[%s338_s2] sm:$0xff] %vm373_vm1, %v2546_v44  ;;  %v2549_v38 = vadd.f32 %v2737_v41, %v2548_v56  ;;  %v2902_v57 = vpop.f32.mrb[35].mxu1 }
 0x717   : > { %2553 = vst.msk [vmem:[%s338_s2 + $0x8] sm:$0xff] %vm373_vm1, %v2549_v38 }
 0x718   : > { %3171 = shalt.err (!%p3168_p7)
}
 0x719   : > { %s3172_s13 = scalar_lea.hbm %s3957_s14, 256  ;;  %s3176_s0 = scalar_lea.hbm %s4009_s6, 512 }
 0x71a   : > { %p3173_p9 = scmp.ne.s32.totalorder %s3957_s14, %s3172_s13  ;;  %p3177_p11 = scmp.lt.u32.totalorder %s3957_s14, %s4009_s6 }
 0x71b   : > { %p3178_p2 = scmp.lt.u32.totalorder %s3176_s0, %s3172_s13  ;;  %p3180_p1 = scmp.lt.u32.totalorder %s3172_s13, %s3957_s14 }
 0x71c   : > { %p3174_p0 = pnand %p3173_p9, %p4037_p13 }
 0x71d   : > { %p3179_p12 = por %p3178_p2, %p3177_p11 }
 0x71e   : > { %p3175_p8 = pneg %p3174_p0 }
 0x71f   : > { %p3181_p6 = por %p3180_p1, %p3179_p12 }
 0x721   : > { %p3182_p10 = pnand %p3181_p6, %p3175_p8 }
 0x723   : > { %3185 = shalt.err (!%p3182_p10)
}
 0x724   : > { %s3257_s2 = smov 128  }
 0x725   : > { %2915 = dma.vmem_to_hbm [thread:$0]  (%p4037_p13), %s3951_s19, 256, %s3957_s14, %s2555_s25, %s3257_s2, %s3257_s2, %s3254_s16  }
 0x726 PF: > { %s2583_s18 = sand.u32 1, %s3224_s21   ;;  %p4038_p4 = scmp.ne.s32.totalorder %s4021_s28, 0 }
 0x727   : > { %p4039_p5 = scmp.ge.s32.totalorder %s3236_s24, 2  ;;  %s2584_s29 = scalar_lea.sflag [#allocation4], %s2583_s18 }
 0x729   : > { %p2932_p3 = pnand %p4039_p5, %p4038_p4 }
 0x72b   : > { %3219 = dma.done.wait (!%p2932_p3), %s2584_s29, 256  }
 0x72c   : > { %3221 = vsyncadd (!%p2932_p3), %s2584_s29, 4294967040  ;;  %p23_p7 = scmp.ge.s32.totalorder %s3409_s8, 4   ;;  %s4040_s21 = smov %s3228_s22 }
 0x72d   : > { %s4041_s22 = smov %s3232_s23  ;;  %s4042_s23 = smov %s3425_s11 }
 0x72e   : > { %s4043_s24 = smov %s3409_s8  ;;  %25 = sbr.rel (!%p23_p7) target bundleno = 12 (0xc), region = 110 }
 0x735   :  { %2589 = vsyncpa [#allocation3], 1 }
 0x736   :  { %2591 = vsyncpa [#allocation3 + $0x1], 1 }
 0x737   :  { %2592 = vsyncpa [#allocation6], 1 }
 0x738   :  { %2594 = vsyncpa [#allocation6 + $0x1], 1 }
 0x739   :  { %2595 = vsyncpa [#allocation9], 1 }
 0x73a   :  { %2596 = vsyncpa [#allocation4], 1 }
 0x73b   :  { %2598 = vsyncpa [#allocation4 + $0x1], 1 }

</bundles_post_ra>
